<compile_context>
chip_gen: v7x
topology: tpu7x:2x2x1
jax: 0.10.0
libtpu: 0.0.40
codegen_flags: <defaults>
</compile_context>

<pallas_src>
import functools

import jax
import jax.numpy as jnp
from jax.experimental import pallas as pl
from jax.experimental.pallas import tpu as pltpu


def _agnn_kernel(cnt_ref, q_ref, nsrc_ref, srcn_ref, adj_ref, out_ref,
                 m_sc, l_sc, acc_sc, *, approx_recip):
    i = pl.program_id(0)
    k = pl.program_id(1)
    nk = pl.num_programs(1)

    @pl.when(k == 0)
    def _init():
        m_sc[...] = jnp.full(m_sc.shape, -1e30, m_sc.dtype)
        l_sc[...] = jnp.zeros(l_sc.shape, l_sc.dtype)
        acc_sc[...] = jnp.zeros(acc_sc.shape, acc_sc.dtype)

    # Block-sparse skip: this (dst, src) tile has no edges -> no softmax / MXU work.
    @pl.when(cnt_ref[i, k] > 0)
    def _body():
        mask = adj_ref[...] != 0                        # (tm, tk) bool; no i8->f32 pass

        # e = beta * cos(dst, src); q already carries beta and the L2 normalization.
        # Contract over D on both operands (no explicit transpose).
        e = jax.lax.dot_general(
            q_ref[...], nsrc_ref[...],
            dimension_numbers=(((1,), (1,)), ((), ())),
            preferred_element_type=jnp.float32,
        )                                               # (tm, tk) f32

        masked_e = jnp.where(mask, e, jnp.float32(-1e30))
        m_old = m_sc[...]
        m_new = jnp.maximum(m_old, jnp.max(masked_e, axis=-1, keepdims=True))
        alpha = jnp.exp(m_old - m_new)
        # where-guard keeps rows with no edge in this tile at exactly 0
        # (avoids exp(-1e30 - (-1e30)) == 1 for rows that have seen no edge yet).
        p = jnp.where(mask, jnp.exp(masked_e - m_new), 0.0)
        l_sc[...] = alpha * l_sc[...] + jnp.sum(p, axis=-1, keepdims=True)

        # Rebuild the value tile feat = norm_h * ||feat|| with one (tk, D) multiply
        # instead of streaming a second (tk, D) feature operand from HBM.
        v = (nsrc_ref[...].astype(jnp.float32) * srcn_ref[...]).astype(nsrc_ref.dtype)
        acc_sc[...] = alpha * acc_sc[...] + jnp.dot(
            p.astype(v.dtype), v, preferred_element_type=jnp.float32)
        m_sc[...] = m_new

    @pl.when(k == nk - 1)
    def _finalize():
        # Guard: dst rows with no incoming edges (and padded rows) -> 0, not NaN.
        l_safe = jnp.maximum(l_sc[...], jnp.float32(1e-20))
        out_ref[...] = (acc_sc[...] *
                        pl.reciprocal(l_safe, approx=approx_recip)).astype(out_ref.dtype)


def _round_up(x: int, m: int) -> int:
    return (x + m - 1) // m * m


def agnn_conv(feat: jax.Array, adj: jax.Array, beta,
              *, tm: int = 256, tk: int = 1024, use_bf16: bool = True) -> jax.Array:
    """Dense AGNNConv forward.

    feat: (N, D) float node features.
    adj:  (N, N) adjacency mask, adj[dst, src] != 0 iff there is an edge src->dst.
    beta: scalar (init_beta / learned beta value).
    """
    N, D = feat.shape
    assert adj.shape == (N, N)
    assert tm % 32 == 0 and tk % 128 == 0, "tile sizes must respect int8/(8,128) tiling"

    n_base = _round_up(N, 128)
    tm = min(tm, n_base)
    tk = min(tk, n_base)
    # Keep >= 2 dst tiles when possible so the "parallel" dst axis can load-balance
    # across v7x's two TensorCores (no-op on v5e/v6e).
    while tm > 128 and _round_up(N, tm) // tm < 2:
        tm //= 2

    Np_r = _round_up(N, tm)   # dst-row padding
    Np_c = _round_up(N, tk)   # src-row padding
    gi, gk = Np_r // tm, Np_c // tk

    mat_dtype = jnp.bfloat16 if use_bf16 else jnp.float32

    # ---- one-shot pre-pass (hoisted out of the hot loop) ----
    feat_f32 = feat.astype(jnp.float32)
    nrm = jnp.sqrt(jnp.sum(feat_f32 * feat_f32, axis=-1, keepdims=True))
    norm_h = feat_f32 / jnp.maximum(nrm, 1e-12)              # F.normalize(p=2, dim=-1)
    beta_f = jnp.asarray(beta, jnp.float32)

    # D is intentionally NOT padded (full-D blocks are legal); pad rows only.
    q_h = jnp.zeros((Np_r, D), mat_dtype).at[:N].set((beta_f * norm_h).astype(mat_dtype))
    nsrc = jnp.zeros((Np_c, D), mat_dtype).at[:N].set(norm_h.astype(mat_dtype))
    srcn = jnp.zeros((Np_c, 1), jnp.float32).at[:N].set(nrm)
    adj_i8 = jnp.zeros((Np_r, Np_c), jnp.int8).at[:N, :N].set((adj != 0).astype(jnp.int8))

    # Per-tile edge counts for block-sparse skipping (scalar-prefetched into SMEM).
    cnt = adj_i8.astype(jnp.int32).reshape(gi, tm, gk, tk).sum(axis=(1, 3)).astype(jnp.int32)

    # Raise the scoped VMEM limit only when big tiles need it (v5e default is 16 MiB;
    # keep well under v7x's 64 MiB physical VMEM).
    feat_bytes = 2 if use_bf16 else 4
    est_vmem = (2 * (tm * D * feat_bytes + tk * D * feat_bytes + tk * 4 + tm * tk)
                + 2 * tm * D * 4 + tm * D * 4 + 2 * tm * 4)
    vmem_limit = None
    if est_vmem > 12 * 1024 * 1024:
        vmem_limit = int(min(2 * est_vmem, 56 * 1024 * 1024))

    kernel = functools.partial(_agnn_kernel, approx_recip=use_bf16)

    out_p = pl.pallas_call(
        kernel,
        out_shape=jax.ShapeDtypeStruct((Np_r, D), jnp.float32),
        grid_spec=pltpu.PrefetchScalarGridSpec(
            num_scalar_prefetch=1,
            grid=(gi, gk),
            in_specs=[
                pl.BlockSpec((tm, D), lambda i, k, cnt: (i, 0)),    # beta * normalized dst
                pl.BlockSpec((tk, D), lambda i, k, cnt: (k, 0)),    # normalized src (key/value basis)
                pl.BlockSpec((tk, 1), lambda i, k, cnt: (k, 0)),    # src row L2 norms
                pl.BlockSpec((tm, tk), lambda i, k, cnt: (i, k)),   # int8 adjacency tile
                # NOTE: if DMA shows up exposed after these changes, add
                # pipeline_mode=pl.Buffered(3) on the src / adj specs.
            ],
            out_specs=pl.BlockSpec((tm, D), lambda i, k, cnt: (i, 0)),
            scratch_shapes=[
                pltpu.VMEM((tm, 1), jnp.float32),   # running row max
                pltpu.VMEM((tm, 1), jnp.float32),   # running denominator
                pltpu.VMEM((tm, D), jnp.float32),   # output accumulator
            ],
        ),
        compiler_params=pltpu.CompilerParams(
            dimension_semantics=("parallel", "arbitrary"),
            vmem_limit_bytes=vmem_limit,
        ),
    )(cnt, q_h, nsrc, srcn, adj_i8)

    return out_p[:N]


def agnn_conv_ref(feat, adj, beta):
    """Pure-JAX reference for verification."""
    nrm = jnp.maximum(jnp.linalg.norm(feat, axis=-1, keepdims=True), 1e-12)
    norm_h = feat / nrm
    e = beta * (norm_h @ norm_h.T)
    logits = jnp.where(adj > 0, e, -jnp.inf)
    p = jax.nn.softmax(logits, axis=-1)
    p = jnp.where(adj > 0, p, 0.0)
    return p @ feat


if __name__ == "__main__":
    key = jax.random.PRNGKey(0)
    k_feat, k_adj = jax.random.split(key)

    N, D = 256, 32  # small synthetic graph: 256 nodes, hidden dim 32

    feat = jax.random.normal(k_feat, (N, D), dtype=jnp.float32)

    # random sparse-ish adjacency + self-loops
    adj = (jax.random.uniform(k_adj, (N, N)) < 0.10).astype(jnp.float32)
    adj = jnp.maximum(adj, jnp.eye(N, dtype=jnp.float32))
    # carve out an all-zero (128,128) block to exercise the block-sparse tile skip
    adj = adj.at[:128, 128:].set(0.0)
    # one fully isolated dst node (no incoming edges) to exercise the empty-row guard
    adj = adj.at[7, :].set(0.0)

    beta = 1.5  # non-default init_beta so the scalar path is actually exercised

    ref = agnn_conv_ref(feat, adj, jnp.float32(beta))

    # f32 path, small tiles -> grid (2, 2): exercises online softmax, tile skip, empty row.
    out_f32 = jax.block_until_ready(
        agnn_conv(feat, adj, beta, tm=128, tk=128, use_bf16=False))
    assert out_f32.shape == (N, D)
    assert jnp.allclose(out_f32, ref, atol=2e-3, rtol=2e-3), "f32 path mismatch vs ref"

    # bf16 fast path with default tile sizes (clamped for this small graph).
    out_bf16 = jax.block_until_ready(agnn_conv(feat, adj, beta, use_bf16=True))
    assert out_bf16.shape == (N, D)
    assert jnp.allclose(out_bf16, ref, atol=4e-2, rtol=4e-2), "bf16 path mismatch vs ref"

    print("KERNEL_OK")
</pallas_src>

<mosaic_0001>
module attributes {stable_mosaic.version = 11 : i64} {
  func.func @_agnn_kernel(%arg0: i32, %arg1: i32, %arg2: memref<2x2xi32, #tpu.memory_space<smem>>, %arg3: memref<128x32xf32, #tpu.memory_space<vmem>>, %arg4: memref<128x32xf32, #tpu.memory_space<vmem>>, %arg5: memref<128x1xf32, #tpu.memory_space<vmem>>, %arg6: memref<128x128xi8, #tpu.memory_space<vmem>>, %arg7: memref<128x32xf32, #tpu.memory_space<vmem>>, %arg8: memref<128x1xf32, #tpu.memory_space<vmem>>, %arg9: memref<128x1xf32, #tpu.memory_space<vmem>>, %arg10: memref<128x32xf32, #tpu.memory_space<vmem>>) attributes {dimension_semantics = [#tpu.dimension_semantics<parallel>, #tpu.dimension_semantics<arbitrary>], iteration_bounds = array<i64: 2, 2>, scalar_prefetch = 1 : i64, scratch_operands = 3 : i64, tpu.core_type = #tpu.core_type<tc>, window_params = [{transform_indices = @transform_0, window_bounds = array<i64: 128, 32>}, {transform_indices = @transform_1, window_bounds = array<i64: 128, 32>}, {transform_indices = @transform_2, window_bounds = array<i64: 128, 1>}, {transform_indices = @transform_3, window_bounds = array<i64: 128, 128>}, {transform_indices = @transform_4, window_bounds = array<i64: 128, 32>}]} {
    %c0_i32 = arith.constant 0 : i32
    %0 = arith.cmpi eq, %arg1, %c0_i32 : i32
    %1 = arith.extui %0 : i1 to i32
    %c0_i32_0 = arith.constant 0 : i32
    %2 = arith.cmpi ne, %1, %c0_i32_0 : i32
    scf.if %2 {
      %cst = arith.constant -1.000000e+30 : f32
      %12 = vector.broadcast %cst : f32 to vector<128x1xf32>
      %c0 = arith.constant 0 : index
      %c0_4 = arith.constant 0 : index
      %13 = vector.load %arg8[%c0, %c0_4] : memref<128x1xf32, #tpu.memory_space<vmem>>, vector<128x1xf32>
      tpu.vector_store %arg8[%c0, %c0_4], %12 {strides = array<i32>} : memref<128x1xf32, #tpu.memory_space<vmem>>, vector<128x1xf32>,
      %cst_5 = arith.constant 0.000000e+00 : f32
      %14 = vector.broadcast %cst_5 : f32 to vector<128x1xf32>
      %c0_6 = arith.constant 0 : index
      %c0_7 = arith.constant 0 : index
      %15 = vector.load %arg9[%c0_6, %c0_7] : memref<128x1xf32, #tpu.memory_space<vmem>>, vector<128x1xf32>
      tpu.vector_store %arg9[%c0_6, %c0_7], %14 {strides = array<i32>} : memref<128x1xf32, #tpu.memory_space<vmem>>, vector<128x1xf32>,
      %cst_8 = arith.constant 0.000000e+00 : f32
      %16 = vector.broadcast %cst_8 : f32 to vector<128x32xf32>
      %c0_9 = arith.constant 0 : index
      %c0_10 = arith.constant 0 : index
      %17 = vector.load %arg10[%c0_9, %c0_10] : memref<128x32xf32, #tpu.memory_space<vmem>>, vector<128x32xf32>
      tpu.vector_store %arg10[%c0_9, %c0_10], %16 {strides = array<i32>} : memref<128x32xf32, #tpu.memory_space<vmem>>, vector<128x32xf32>,
    } else {
    }
    %3 = arith.index_cast %arg0 : i32 to index
    %4 = arith.index_cast %arg1 : i32 to index
    %5 = memref.load %arg2[%3, %4] : memref<2x2xi32, #tpu.memory_space<smem>>
    %c0_i32_1 = arith.constant 0 : i32
    %6 = arith.cmpi sgt, %5, %c0_i32_1 : i32
    %7 = arith.extui %6 : i1 to i32
    %c0_i32_2 = arith.constant 0 : i32
    %8 = arith.cmpi ne, %7, %c0_i32_2 : i32
    scf.if %8 {
      %c0 = arith.constant 0 : index
      %c0_4 = arith.constant 0 : index
      %12 = vector.load %arg6[%c0, %c0_4] : memref<128x128xi8, #tpu.memory_space<vmem>>, vector<128x128xi8>
      %c0_i8 = arith.constant 0 : i8
      %13 = vector.broadcast %c0_i8 : i8 to vector<128x128xi8>
      %14 = arith.cmpi ne, %12, %13 : vector<128x128xi8>
      %c0_5 = arith.constant 0 : index
      %c0_6 = arith.constant 0 : index
      %15 = vector.load %arg3[%c0_5, %c0_6] : memref<128x32xf32, #tpu.memory_space<vmem>>, vector<128x32xf32>
      %c0_7 = arith.constant 0 : index
      %c0_8 = arith.constant 0 : index
      %16 = vector.load %arg4[%c0_7, %c0_8] : memref<128x32xf32, #tpu.memory_space<vmem>>, vector<128x32xf32>
      %cst = arith.constant dense<0.000000e+00> : vector<128x128xf32>
      %17 = tpu.matmul %15, %16, %cst {dimension_numbers = #tpu.dot_dimension_numbers<[1], [1], [0], [0], [0, 0, 1, 0], [], []>} : vector<128x32xf32>, vector<128x32xf32>, vector<128x128xf32> -> vector<128x128xf32>
      %cst_9 = arith.constant -1.000000e+30 : f32
      %18 = vector.broadcast %cst_9 : f32 to vector<128x128xf32>
      %19 = arith.select %14, %17, %18 : vector<128x128xi1>, vector<128x128xf32>
      %c0_10 = arith.constant 0 : index
      %c0_11 = arith.constant 0 : index
      %20 = vector.load %arg8[%c0_10, %c0_11] : memref<128x1xf32, #tpu.memory_space<vmem>>, vector<128x1xf32>
      %cst_12 = arith.constant dense<0xFF800000> : vector<128xf32>
      %21 = vector.multi_reduction <maximumf>, %19, %cst_12 [1] : vector<128x128xf32> to vector<128xf32>
      %22 = vector.shape_cast %21 : vector<128xf32> to vector<128x1xf32>
      %23 = arith.maximumf %20, %22 : vector<128x1xf32>
      %24 = arith.subf %20, %23 : vector<128x1xf32>
      %25 = math.exp %24 : vector<128x1xf32>
      %26 = vector.broadcast %23 : vector<128x1xf32> to vector<128x128xf32>
      %27 = arith.subf %19, %26 : vector<128x128xf32>
      %28 = math.exp %27 : vector<128x128xf32>
      %cst_13 = arith.constant 0.000000e+00 : f32
      %29 = vector.broadcast %cst_13 : f32 to vector<128x128xf32>
      %30 = arith.select %14, %28, %29 : vector<128x128xi1>, vector<128x128xf32>
      %c0_14 = arith.constant 0 : index
      %c0_15 = arith.constant 0 : index
      %31 = vector.load %arg9[%c0_14, %c0_15] : memref<128x1xf32, #tpu.memory_space<vmem>>, vector<128x1xf32>
      %32 = arith.mulf %25, %31 : vector<128x1xf32>
      %cst_16 = arith.constant dense<0.000000e+00> : vector<128xf32>
      %33 = vector.multi_reduction <add>, %30, %cst_16 [1] : vector<128x128xf32> to vector<128xf32>
      %34 = vector.shape_cast %33 : vector<128xf32> to vector<128x1xf32>
      %35 = arith.addf %32, %34 : vector<128x1xf32>
      %c0_17 = arith.constant 0 : index
      %c0_18 = arith.constant 0 : index
      %36 = vector.load %arg9[%c0_17, %c0_18] : memref<128x1xf32, #tpu.memory_space<vmem>>, vector<128x1xf32>
      tpu.vector_store %arg9[%c0_17, %c0_18], %35 {strides = array<i32>} : memref<128x1xf32, #tpu.memory_space<vmem>>, vector<128x1xf32>,
      %c0_19 = arith.constant 0 : index
      %c0_20 = arith.constant 0 : index
      %37 = vector.load %arg4[%c0_19, %c0_20] : memref<128x32xf32, #tpu.memory_space<vmem>>, vector<128x32xf32>
      %c0_21 = arith.constant 0 : index
      %c0_22 = arith.constant 0 : index
      %38 = vector.load %arg5[%c0_21, %c0_22] : memref<128x1xf32, #tpu.memory_space<vmem>>, vector<128x1xf32>
      %39 = vector.broadcast %38 : vector<128x1xf32> to vector<128x32xf32>
      %40 = arith.mulf %37, %39 : vector<128x32xf32>
      %c0_23 = arith.constant 0 : index
      %c0_24 = arith.constant 0 : index
      %41 = vector.load %arg10[%c0_23, %c0_24] : memref<128x32xf32, #tpu.memory_space<vmem>>, vector<128x32xf32>
      %42 = vector.broadcast %25 : vector<128x1xf32> to vector<128x32xf32>
      %43 = arith.mulf %42, %41 : vector<128x32xf32>
      %cst_25 = arith.constant dense<0.000000e+00> : vector<128x32xf32>
      %44 = tpu.matmul %30, %40, %cst_25 {dimension_numbers = #tpu.dot_dimension_numbers<[1], [0], [0], [1], [0, 0, 1, 1], [], []>} : vector<128x128xf32>, vector<128x32xf32>, vector<128x32xf32> -> vector<128x32xf32>
      %45 = arith.addf %43, %44 : vector<128x32xf32>
      %c0_26 = arith.constant 0 : index
      %c0_27 = arith.constant 0 : index
      %46 = vector.load %arg10[%c0_26, %c0_27] : memref<128x32xf32, #tpu.memory_space<vmem>>, vector<128x32xf32>
      tpu.vector_store %arg10[%c0_26, %c0_27], %45 {strides = array<i32>} : memref<128x32xf32, #tpu.memory_space<vmem>>, vector<128x32xf32>,
      %c0_28 = arith.constant 0 : index
      %c0_29 = arith.constant 0 : index
      %47 = vector.load %arg8[%c0_28, %c0_29] : memref<128x1xf32, #tpu.memory_space<vmem>>, vector<128x1xf32>
      tpu.vector_store %arg8[%c0_28, %c0_29], %23 {strides = array<i32>} : memref<128x1xf32, #tpu.memory_space<vmem>>, vector<128x1xf32>,
    } else {
    }
    %c1_i32 = arith.constant 1 : i32
    %9 = arith.cmpi eq, %arg1, %c1_i32 : i32
    %10 = arith.extui %9 : i1 to i32
    %c0_i32_3 = arith.constant 0 : i32
    %11 = arith.cmpi ne, %10, %c0_i32_3 : i32
    scf.if %11 {
      %c0 = arith.constant 0 : index
      %c0_4 = arith.constant 0 : index
      %12 = vector.load %arg9[%c0, %c0_4] : memref<128x1xf32, #tpu.memory_space<vmem>>, vector<128x1xf32>
      %cst = arith.constant 9.99999968E-21 : f32
      %13 = vector.broadcast %cst : f32 to vector<128x1xf32>
      %14 = arith.maximumf %12, %13 : vector<128x1xf32>
      %c0_5 = arith.constant 0 : index
      %c0_6 = arith.constant 0 : index
      %15 = vector.load %arg10[%c0_5, %c0_6] : memref<128x32xf32, #tpu.memory_space<vmem>>, vector<128x32xf32>
      %16 = tpu.reciprocal %14 : vector<128x1xf32> -> vector<128x1xf32>
      %17 = vector.broadcast %16 : vector<128x1xf32> to vector<128x32xf32>
      %18 = arith.mulf %15, %17 : vector<128x32xf32>
      %c0_7 = arith.constant 0 : index
      %c0_8 = arith.constant 0 : index
      %19 = vector.load %arg7[%c0_7, %c0_8] : memref<128x32xf32, #tpu.memory_space<vmem>>, vector<128x32xf32>
      tpu.vector_store %arg7[%c0_7, %c0_8], %18 {strides = array<i32>} : memref<128x32xf32, #tpu.memory_space<vmem>>, vector<128x32xf32>,
    } else {
    }
    return
  }
  func.func @transform_0(%arg0: i32, %arg1: i32, %arg2: memref<2x2xi32, #tpu.memory_space<smem>>) -> (i32, i32) {
    %c0_i32 = arith.constant 0 : i32
    %c0_i32_0 = arith.constant 0 : i32
    return %arg0, %c0_i32 : i32, i32
  }
  func.func @transform_1(%arg0: i32, %arg1: i32, %arg2: memref<2x2xi32, #tpu.memory_space<smem>>) -> (i32, i32) {
    %c0_i32 = arith.constant 0 : i32
    %c0_i32_0 = arith.constant 0 : i32
    return %arg1, %c0_i32 : i32, i32
  }
  func.func @transform_2(%arg0: i32, %arg1: i32, %arg2: memref<2x2xi32, #tpu.memory_space<smem>>) -> (i32, i32) {
    %c0_i32 = arith.constant 0 : i32
    %c0_i32_0 = arith.constant 0 : i32
    return %arg1, %c0_i32 : i32, i32
  }
  func.func @transform_3(%arg0: i32, %arg1: i32, %arg2: memref<2x2xi32, #tpu.memory_space<smem>>) -> (i32, i32) {
    %c0_i32 = arith.constant 0 : i32
    return %arg0, %arg1 : i32, i32
  }
  func.func @transform_4(%arg0: i32, %arg1: i32, %arg2: memref<2x2xi32, #tpu.memory_space<smem>>) -> (i32, i32) {
    %c0_i32 = arith.constant 0 : i32
    %c0_i32_0 = arith.constant 0 : i32
    return %arg0, %c0_i32 : i32, i32
  }
}

</mosaic_0001>

<bundles_post_ra>
// kernel: tpu_custom_call.1
= control target key start
LH: loop header
LB: loop body
LE: loop exit
PB: predicated region body
PF: predicated region fallthrough
CT: control target
= control target key end

     0   :  { %s3335_s0 = inlined_call_operand.vmem [shape: s32[2,2], index: 0, kind: input, shape index: {}]   ;;  %s3336_s1 = inlined_call_operand.vmem [shape: f32[256,32], index: 1, kind: input, shape index: {}]   ;;  %s3337_s2 = inlined_call_operand.vmem [shape: f32[256,32], index: 2, kind: input, shape index: {}]   ;;  %s3338_s3 = inlined_call_operand.vmem [shape: f32[256,1], index: 3, kind: input, shape index: {}]   ;;  %s3339_s4 = inlined_call_operand.vmem [shape: s8[256,256], index: 4, kind: input, shape index: {}]   ;;  %s3340_s5 = inlined_call_operand.vmem [shape: f32[256,32], index: 5, kind: output, shape index: {}]  }
   0x1   :  { %s10_s20 = sshll.u32 %s3335_s0, 4  ;;  %s11_s20 = int_to_ptr.vmem [resolvable:$true] %s10_s20 }
   0x2   :  { %s2387_s21 = scalar_lea.vmem %s11_s20, 32  ;;  %p2392_p1 = scmp.lt.s32.totalorder %s11_s20, %s11_s20 }
   0x3   :  { %p2388_p0 = scmp.ne.s32.totalorder %s11_s20, %s2387_s21  ;;  %p2393_p2 = scmp.lt.s32.totalorder %s2387_s21, %s2387_s21 }
   0x5   :  { %p2394_p3 = por %p2393_p2, %p2392_p1 }
   0x7   :  { %p2395_p4 = pnand %p2394_p3, %p2388_p0 }
   0x9   :  { %2398 = shalt.err (!%p2395_p4)  }
   0xa   :  { %s2457_s22 = smov [#allocation6]  }
   0xb   :  { %13 = dma.vmem_to_smem %s11_s20, 32, %s2457_s22, [#allocation5] }
   0xc   :  { %2427 = dma.done.wait [#allocation5], 32 }
   0xd   :  { %2428 = vsyncadd [#allocation5], 4294967264 }
   0xe   :  { %15 = sfence }
   0xf   :  { %s2495_s23 = smov 0   ;;  %s2497_s24 = smov 0  }
  0x10   :  { %s2499_s25 = smov 0   ;;  %s2501_s0 = smov 0  }
  0x11   :  { %s2503_s26 = smov 0   ;;  %s2505_s27 = smov 0  }
  0x12   :  { %s2507_s28 = smov 0  }
  0x13 LB: > { %s30_s29 = sadd.s32 1, %s2447_s26  ;;  %s33_s30 = sadd.s32 1, %s2451_s27  ;;  %s2455_s28 = sphi %s2507_s28, %s21_s28   ;;  %s2451_s27 = sphi %s2505_s27, %s3447_s27   ;;  %s2447_s26 = sphi %s2503_s26, %s3446_s26   ;;  %s2443_s0 = sphi %s2501_s0, %s3445_s0   ;;  %s2439_s25 = sphi %s2499_s25, %s3444_s25   ;;  %s2435_s24 = sphi %s2497_s24, %s3443_s24   ;;  %s2431_s23 = sphi %s2495_s23, %s3442_s23  }
  0x14   : > { %p31_p5 = scmp.ge.s32.totalorder %s30_s29, 2  ;;  %p127_p6 = scmp.ne.s32.totalorder %s2435_s24, %s2431_s23 }
  0x15   : > { %p128_p7 = scmp.eq.s32.totalorder %s2455_s28, 0  ;;  %s120_s9 = sadd.s32 1, %s2435_s24 }
  0x16   : > { %s3449_s29 = smov (%p31_p5, %s30_s29), 0  ;;  %s3451_s30 = smov (!%p31_p5, %s33_s30), %s2451_s27 }
  0x17   : > { %p129_p8 = por %p128_p7, %p127_p6  ;;  %p35_p9 = scmp.ge.s32.totalorder %s3451_s30, 2 }
  0x18   : > { %s116_s6 = ssub.s32 %s2447_s26, %s3449_s29  ;;  %p1900_p11 = scmp.ge.s32.totalorder %s2455_s28, 4 }
  0x19   : > { %s3453_s30 = smov (%p35_p9, %s3451_s30), 0 }
  0x1a   : > { %s115_s7 = ssub.s32 %s2451_s27, %s3453_s30  ;;  %179 = sbr.rel (%p1900_p11) target bundleno = 41 (0x29), region = 16 }
  0x1b   : > { %s117_s8 = sor.u32 %s116_s6, %s115_s7 }
  0x1c   : > { %p118_p10 = scmp.eq.s32.totalorder %s117_s8, 0 }
  0x1e   : > { %s2546_s10 = scalar_select %p118_p10, %s2435_s24, %s120_s9  }
  0x21   : > { %209 = sbr.rel (!%p129_p8) target bundleno = 41 (0x29), region = 32  ;;  %s211_s11 = sand.u32 (%p129_p8), 1, %s2435_s24  }
  0x22   : > { %s1969_s12 = sshll.u32 (%p129_p8), %s2451_s27, 3  ;;  %s1901_s13 = sshll.u32 (%p129_p8), %s211_s11, 5 }
  0x23   : > { %s216_s14 = sadd.s32 (%p129_p8), %s2447_s26, %s1969_s12  ;;  %s213_s19 = scalar_lea.vmem (%p129_p8), [#allocation7], %s1901_s13 }
  0x24   : > { %s1904_s15 = sshll.u32 (%p129_p8), %s216_s14, 3 }
  0x25   : > { %s218_s18 = scalar_lea.vmem (%p129_p8), %s3339_s4, %s1904_s15 }
  0x26   : > { %v252_v0 = vld [vmem:[%s218_s18] sm:$0xff] (%p129_p8)  ;;  %v254_v1 = vld [vmem:[%s218_s18 + $0x10] sm:$0xff] (%p129_p8) }
  0x27   : > { %v256_v2 = vld [vmem:[%s218_s18 + $0x20] sm:$0xff] (%p129_p8)  ;;  %253 = vst [vmem:[%s213_s19] sm:$0xff] (%p129_p8), %v252_v0  ;;  %255 = vst [vmem:[%s213_s19 + $0x8] sm:$0xff] (%p129_p8), %v254_v1  ;;  %v258_v3 = vld [vmem:[%s218_s18 + $0x30] sm:$0xff] (%p129_p8) }
  0x28   : > { %257 = vst [vmem:[%s213_s19 + $0x10] sm:$0xff] %v256_v2  ;;  %259 = vst [vmem:[%s213_s19 + $0x18] sm:$0xff] %v258_v3 }
  0x29 PF: > { %p1905_p12 = scmp.ge.s32.totalorder %s2455_s28, 1  ;;  %p264_p13 = scmp.lt.s32.totalorder %s2455_s28, 5 }
  0x2b   : > { %p265_p0 = pnand %p1905_p12, %p264_p13 }
  0x2c   : > { %s271_s20 = sand.u32 (!%p265_p0), 1, %s2431_s23   ;;  %s1907_s21 = sshll.u32 (!%p265_p0), %s2443_s0, 4 }
  0x2d   : > { %268 = sbr.rel (%p265_p0) target bundleno = 1133 (0x46d), region = 70  ;;  %s1906_s22 = sshll.u32 (!%p265_p0), %s271_s20, 5 }
  0x2e   : > { %p312_p1 = scmp.lt.s32.totalorder (!%p265_p0), %s1907_s21, 31  ;;  %s1909_s6 = sshll.u32 (!%p265_p0), %s2439_s25, 4 }
  0x2f   : > { %p318_p2 = scmp.lt.s32.totalorder (!%p265_p0), %s1909_s6, 31  ;;  %p1915_p3 = scmp.ne.s32.totalorder (!%p265_p0), %s2439_s25, 0 }
  0x34   : > { %s3455_s21 = smov (!%p312_p1, %s1907_s21), 31  ;;  %s3457_s6 = smov (!%p318_p2, %s1909_s6), 31 }
  0x35   : > { %s1908_s7 = sshll.u32 %s3455_s21, 3  ;;  %s1910_s15 = sshll.u32 %s3457_s6, 3  ;;  %vm342_vm0 = vcmask (!%p1915_p3), 7168   ;;  %vm375_vm1 = vcmask (!%p1915_p3), 261120   ;;  %v2458_v4 = vmov (!%p1915_p3), -1e+30  }
  0x36   : > { %s2563_s11 = scalar_lea.vmem %s3336_s1, %s1908_s7  ;;  %s2568_s14 = scalar_lea.vmem %s3340_s5, %s1908_s7  ;;  %343 = vst.msk [vmem:[#allocation2] sm:$0xff] (!%p1915_p3), %vm342_vm0, %v2458_v4  ;;  %344 = vst.msk [vmem:[#allocation2 + $0x8] sm:$0xff] (!%p1915_p3), %vm342_vm0, %v2458_v4  ;;  %v2459_v5 = vmov (!%p1915_p3), 0.0  }
  0x37   : > { %s2573_s17 = scalar_lea.vmem %s3337_s2, %s1910_s15  ;;  %s2578_s20 = scalar_lea.vmem %s3338_s3, %s1910_s15  ;;  %345 = vst.msk [vmem:[#allocation2 + $0x10] sm:$0xff] (!%p1915_p3), %vm342_vm0, %v2458_v4  ;;  %346 = vst.msk [vmem:[#allocation2 + $0x18] sm:$0xff] (!%p1915_p3), %vm342_vm0, %v2458_v4 }
  0x38   : > { %s2580_s21 = scalar_lea.vmem [#allocation7], %s1906_s22  ;;  %341 = sbr.rel (%p1915_p3) target bundleno = 78 (0x4e), region = 78  ;;  %347 = vst.msk [vmem:[#allocation2 + $0x20] sm:$0xff] (!%p1915_p3), %vm342_vm0, %v2458_v4  ;;  %348 = vst.msk [vmem:[#allocation2 + $0x28] sm:$0xff] (!%p1915_p3), %vm342_vm0, %v2458_v4 }
  0x39   : > { %349 = vst.msk [vmem:[#allocation2 + $0x30] sm:$0xff] (!%p1915_p3), %vm342_vm0, %v2458_v4  ;;  %350 = vst.msk [vmem:[#allocation2 + $0x38] sm:$0xff] (!%p1915_p3), %vm342_vm0, %v2458_v4 }
  0x3a   : > { %351 = vst.msk [vmem:[#allocation2 + $0x40] sm:$0xff] (!%p1915_p3), %vm342_vm0, %v2458_v4  ;;  %352 = vst.msk [vmem:[#allocation2 + $0x48] sm:$0xff] (!%p1915_p3), %vm342_vm0, %v2458_v4 }
  0x3b   : > { %353 = vst.msk [vmem:[#allocation2 + $0x50] sm:$0xff] (!%p1915_p3), %vm342_vm0, %v2458_v4  ;;  %354 = vst.msk [vmem:[#allocation2 + $0x58] sm:$0xff] (!%p1915_p3), %vm342_vm0, %v2458_v4 }
  0x3c   : > { %355 = vst.msk [vmem:[#allocation2 + $0x60] sm:$0xff] (!%p1915_p3), %vm342_vm0, %v2458_v4  ;;  %356 = vst.msk [vmem:[#allocation2 + $0x68] sm:$0xff] (!%p1915_p3), %vm342_vm0, %v2458_v4 }
  0x3d   : > { %357 = vst.msk [vmem:[#allocation2 + $0x70] sm:$0xff] (!%p1915_p3), %vm342_vm0, %v2458_v4  ;;  %358 = vst.msk [vmem:[#allocation2 + $0x78] sm:$0xff] (!%p1915_p3), %vm342_vm0, %v2458_v4 }
  0x3e   : > { %359 = vst.msk [vmem:[#allocation3] sm:$0xff] (!%p1915_p3), %vm342_vm0, %v2459_v5  ;;  %360 = vst.msk [vmem:[#allocation3 + $0x8] sm:$0xff] (!%p1915_p3), %vm342_vm0, %v2459_v5 }
  0x3f   : > { %361 = vst.msk [vmem:[#allocation3 + $0x10] sm:$0xff] %vm342_vm0, %v2459_v5  ;;  %362 = vst.msk [vmem:[#allocation3 + $0x18] sm:$0xff] %vm342_vm0, %v2459_v5 }
  0x40   : > { %363 = vst.msk [vmem:[#allocation3 + $0x20] sm:$0xff] %vm342_vm0, %v2459_v5  ;;  %364 = vst.msk [vmem:[#allocation3 + $0x28] sm:$0xff] %vm342_vm0, %v2459_v5 }
  0x41   : > { %365 = vst.msk [vmem:[#allocation3 + $0x30] sm:$0xff] %vm342_vm0, %v2459_v5  ;;  %366 = vst.msk [vmem:[#allocation3 + $0x38] sm:$0xff] %vm342_vm0, %v2459_v5 }
  0x42   : > { %367 = vst.msk [vmem:[#allocation3 + $0x40] sm:$0xff] %vm342_vm0, %v2459_v5  ;;  %368 = vst.msk [vmem:[#allocation3 + $0x48] sm:$0xff] %vm342_vm0, %v2459_v5 }
  0x43   : > { %369 = vst.msk [vmem:[#allocation3 + $0x50] sm:$0xff] %vm342_vm0, %v2459_v5  ;;  %370 = vst.msk [vmem:[#allocation3 + $0x58] sm:$0xff] %vm342_vm0, %v2459_v5 }
  0x44   : > { %371 = vst.msk [vmem:[#allocation3 + $0x60] sm:$0xff] %vm342_vm0, %v2459_v5  ;;  %372 = vst.msk [vmem:[#allocation3 + $0x68] sm:$0xff] %vm342_vm0, %v2459_v5 }
  0x45   : > { %373 = vst.msk [vmem:[#allocation3 + $0x70] sm:$0xff] %vm342_vm0, %v2459_v5  ;;  %374 = vst.msk [vmem:[#allocation3 + $0x78] sm:$0xff] %vm342_vm0, %v2459_v5 }
  0x46   : > { %376 = vst.msk [vmem:[#allocation4] sm:$0xff] %vm375_vm1, %v2459_v5  ;;  %377 = vst.msk [vmem:[#allocation4 + $0x8] sm:$0xff] %vm375_vm1, %v2459_v5 }
  0x47   : > { %378 = vst.msk [vmem:[#allocation4 + $0x10] sm:$0xff] %vm375_vm1, %v2459_v5  ;;  %379 = vst.msk [vmem:[#allocation4 + $0x18] sm:$0xff] %vm375_vm1, %v2459_v5 }
  0x48   : > { %380 = vst.msk [vmem:[#allocation4 + $0x20] sm:$0xff] %vm375_vm1, %v2459_v5  ;;  %381 = vst.msk [vmem:[#allocation4 + $0x28] sm:$0xff] %vm375_vm1, %v2459_v5 }
  0x49   : > { %382 = vst.msk [vmem:[#allocation4 + $0x30] sm:$0xff] %vm375_vm1, %v2459_v5  ;;  %383 = vst.msk [vmem:[#allocation4 + $0x38] sm:$0xff] %vm375_vm1, %v2459_v5 }
  0x4a   : > { %384 = vst.msk [vmem:[#allocation4 + $0x40] sm:$0xff] %vm375_vm1, %v2459_v5  ;;  %385 = vst.msk [vmem:[#allocation4 + $0x48] sm:$0xff] %vm375_vm1, %v2459_v5 }
  0x4b   : > { %386 = vst.msk [vmem:[#allocation4 + $0x50] sm:$0xff] %vm375_vm1, %v2459_v5  ;;  %387 = vst.msk [vmem:[#allocation4 + $0x58] sm:$0xff] %vm375_vm1, %v2459_v5 }
  0x4c   : > { %388 = vst.msk [vmem:[#allocation4 + $0x60] sm:$0xff] %vm375_vm1, %v2459_v5  ;;  %389 = vst.msk [vmem:[#allocation4 + $0x68] sm:$0xff] %vm375_vm1, %v2459_v5 }
  0x4d   : > { %390 = vst.msk [vmem:[#allocation4 + $0x70] sm:$0xff] %vm375_vm1, %v2459_v5  ;;  %391 = vst.msk [vmem:[#allocation4 + $0x78] sm:$0xff] %vm375_vm1, %v2459_v5 }
  0x4e PF: > { %s392_s22 = sshra.s32 %s2439_s25, 7  ;;  %s397_s6 = sand.u32 127, %s2439_s25 }
  0x4f   : > { %s394_s7 = sadd.s32 %s2443_s0, %s392_s22 }
  0x50   : > { %s1916_s8 = sshll.u32 %s394_s7, 7 }
  0x51   : > { %s398_s9 = sadd.s32 %s1916_s8, %s397_s6 }
  0x52   : > { %s399_s12 = sld [smem:[#allocation6 + %s398_s9]] }
  0x58   : > { %p1917_p4 = scmp.le.s32.totalorder %s399_s12, 0 }
  0x5a   : > { %403 = sbr.rel (%p1917_p4) target bundleno = 958 (0x3be), region = 82 }
  0x61   : > { %v2635_v6 = vld [vmem:[%s2573_s17] sm:$0xff]  ;;  %v2638_v7 = vld [vmem:[%s2573_s17 + $0x8] sm:$0xff]  ;;  %vm3341_vm2 = vcmask 261120   ;;  %v2641_v8 = vld [vmem:[%s2573_s17 + $0x10] sm:$0xff]  ;;  %v2460_v12 = vmov 0  }
  0x62   : > { %v2146_v9 = vpack.c.bf16 %v2638_v7, %v2635_v6  ;;  %vm2647_vm3 = vmpackc.low %vm3341_vm2, %vm3341_vm2  ;;  %v2652_v11 = vld [vmem:[%s2573_s17 + $0x18] sm:$0xff]  ;;  %2288 = vset.pattern.permute.xlu1 %v2460_v12  ;;  %2287 = vset.pattern.permute.xlu0 %v2460_v12  ;;  %v412_v14 = vld [vmem:[%s2563_s11] sm:$0xff] }
  0x63   : > { %v2152_v13 = vpack.c.bf16 %v2652_v11, %v2641_v8  ;;  %v2666_v15 = vld [vmem:[%s2573_s17 + $0x20] sm:$0xff]  ;;  %v2669_v16 = vld [vmem:[%s2573_s17 + $0x28] sm:$0xff]  ;;  %2066 = vmatprep.mubr.msk.f32.mxu0 %vm3341_vm2, %v412_v14  ;;  %v1189_v19 = vld [vmem:[%s2578_s20 + $0x10] sm:$0xff] }
  0x64   : > { %2148 = vmatprep.subr.msk.bf16.mxu0 %vm2647_vm3, %v2146_v9  ;;  %v2158_v17 = vpack.c.bf16 %v2669_v16, %v2666_v15  ;;  %v1188_v18 = vld [vmem:[%s2578_s20 + $0x8] sm:$0xff]  ;;  %v2681_v20 = vld [vmem:[%s2573_s17 + $0x30] sm:$0xff]  ;;  %v2684_v21 = vld [vmem:[%s2573_s17 + $0x38] sm:$0xff] }
  0x65   : > { %2151 = vmatpush3.bf16.xpose.msk.msra.mxu0 %vm2647_vm3, %v2146_v9  ;;  %1210 = vperm.xlu1 %2288, %v1188_v18   ;;  %v2164_v22 = vpack.c.bf16 %v2684_v21, %v2681_v20  ;;  %v1190_v23 = vld [vmem:[%s2578_s20 + $0x18] sm:$0xff]  ;;  %v1191_v24 = vld [vmem:[%s2578_s20 + $0x20] sm:$0xff]  ;;  %v2698_v26 = vld [vmem:[%s2573_s17 + $0x48] sm:$0xff] }
  0x66   : > { %2154 = vmatprep.subr.msk.bf16.mxu0 %vm2647_vm3, %v2152_v13  ;;  %v2695_v25 = vld [vmem:[%s2573_s17 + $0x40] sm:$0xff]  ;;  %v1192_v28 = vld [vmem:[%s2578_s20 + $0x28] sm:$0xff]  ;;  %v1193_v29 = vld [vmem:[%s2578_s20 + $0x30] sm:$0xff] }
  0x67   : > { %v2170_v27 = vpack.c.bf16 %v2698_v26, %v2695_v25  ;;  %v2709_v30 = vld [vmem:[%s2573_s17 + $0x50] sm:$0xff]  ;;  %v2712_v31 = vld [vmem:[%s2573_s17 + $0x58] sm:$0xff]  ;;  %v1195_v34 = vld [vmem:[%s2578_s20 + $0x40] sm:$0xff] }
  0x68   : > { %v2176_v32 = vpack.c.bf16 %v2712_v31, %v2709_v30  ;;  %v1194_v33 = vld [vmem:[%s2578_s20 + $0x38] sm:$0xff]  ;;  %v2723_v35 = vld [vmem:[%s2573_s17 + $0x60] sm:$0xff]  ;;  %v2726_v36 = vld [vmem:[%s2573_s17 + $0x68] sm:$0xff] }
  0x69   : > { %1215 = vperm.xlu1 %2288, %v1189_v19   ;;  %v2182_v37 = vpack.c.bf16 %v2726_v36, %v2723_v35  ;;  %v2735_v38 = vld [vmem:[%s2573_s17 + $0x70] sm:$0xff]  ;;  %v2738_v39 = vld [vmem:[%s2573_s17 + $0x78] sm:$0xff]  ;;  %v413_v41 = vld [vmem:[%s2563_s11 + $0x8] sm:$0xff] }
  0x6a   : > { %v2188_v40 = vpack.c.bf16 %v2738_v39, %v2735_v38  ;;  %v414_v42 = vld [vmem:[%s2563_s11 + $0x10] sm:$0xff]  ;;  %v415_v43 = vld [vmem:[%s2563_s11 + $0x18] sm:$0xff]  ;;  %v416_v44 = vld [vmem:[%s2563_s11 + $0x20] sm:$0xff] }
  0x6b   : > { %v417_v45 = vld [vmem:[%s2563_s11 + $0x28] sm:$0xff]  ;;  %v418_v46 = vld [vmem:[%s2563_s11 + $0x30] sm:$0xff]  ;;  %v419_v47 = vld [vmem:[%s2563_s11 + $0x38] sm:$0xff] }
  0x6c   : > { %v420_v48 = vld [vmem:[%s2563_s11 + $0x40] sm:$0xff]  ;;  %v421_v49 = vld [vmem:[%s2563_s11 + $0x48] sm:$0xff]  ;;  %v422_v50 = vld [vmem:[%s2563_s11 + $0x50] sm:$0xff] }
  0x6d   : > { %2157 = vmatpush3.bf16.xpose.msk.msra.mxu0 %vm2647_vm3, %v2152_v13  ;;  %1220 = vperm.xlu1 %2288, %v1190_v23   ;;  %v423_v51 = vld [vmem:[%s2563_s11 + $0x58] sm:$0xff]  ;;  %v424_v52 = vld [vmem:[%s2563_s11 + $0x60] sm:$0xff]  ;;  %v425_v53 = vld [vmem:[%s2563_s11 + $0x68] sm:$0xff] }
  0x6e   : > { %2160 = vmatprep.subr.msk.bf16.mxu0 %vm2647_vm3, %v2158_v17  ;;  %v426_v54 = vld [vmem:[%s2563_s11 + $0x70] sm:$0xff]  ;;  %v427_v55 = vld [vmem:[%s2563_s11 + $0x78] sm:$0xff]  ;;  %v404_v56 = vld [vmem:[%s2580_s21] sm:$0xff] }
  0x6f   : > { %vm408_vm4 = vnez %v404_v56  ;;  %v405_v59 = vld [vmem:[%s2580_s21 + $0x8] sm:$0xff]  ;;  %v406_v4 = vld [vmem:[%s2580_s21 + $0x10] sm:$0xff] }
  0x70   : > { %v686_v57 = vsel %vm408_vm4, 16843009, %v2460_v12  ;;  %vm409_vm5 = vnez %v405_v59  ;;  %vm410_vm7 = vnez %v406_v4 }
  0x71   : > { %1225 = vperm.xlu1 %2288, %v1191_v24   ;;  %v691_v58 = vunpack.c.1.s8 %v686_v57  ;;  %v690_v61 = vunpack.c.0.s8 %v686_v57  ;;  %v693_v62 = vunpack.c.3.s8 %v686_v57  ;;  %v692_v63 = vunpack.c.2.s8 %v686_v57 }
  0x72   : > { %v2782_v2 = vsel %vm409_vm5, 16843009, %v2460_v12 }
  0x73   : > { %v708_v60 = vpack.c.b16 %v691_v58, %v691_v58  ;;  %v706_v1 = vpack.c.b16 %v690_v61, %v690_v61  ;;  %v712_v3 = vpack.c.b16 %v693_v62, %v693_v62  ;;  %v710_v5 = vpack.c.b16 %v692_v63, %v692_v63 }
  0x74   : > { %v695_v9 = vunpack.c.1.s8 %v2782_v2  ;;  %v697_v14 = vunpack.c.3.s8 %v2782_v2 }
  0x75   : > { %2163 = vmatpush3.bf16.xpose.msk.msra.mxu0 %vm2647_vm3, %v2158_v17  ;;  %1230 = vperm.xlu1 %2288, %v1192_v28   ;;  %v709_v0 = vpack.c.b8 %v708_v60, %v708_v60  ;;  %v707_v10 = vpack.c.b8 %v706_v1, %v706_v1  ;;  %v713_v13 = vpack.c.b8 %v712_v3, %v712_v3 }
  0x76   : > { %2166 = vmatprep.subr.msk.bf16.mxu0 %vm2647_vm3, %v2164_v22  ;;  %v711_v18 = vpack.c.b8 %v710_v5, %v710_v5  ;;  %v716_v19 = vpack.c.b16 %v695_v9, %v695_v9  ;;  %v720_v24 = vpack.c.b16 %v697_v14, %v697_v14 }
  0x77   : > { %vm739_vm6 = vnez %v709_v0  ;;  %vm738_vm8 = vnez %v707_v10  ;;  %vm741_vm9 = vnez %v713_v13 }
  0x78   : > { %v755_v17 = vsel %vm739_vm6, 16843009, %v2460_v12  ;;  %v754_v28 = vsel %vm738_vm8, 16843009, %v2460_v12  ;;  %vm740_vm10 = vnez %v711_v18 }
  0x79   : > { %1235 = vperm.xlu1 %2288, %v1193_v29   ;;  %v771_v23 = vunpack.c.0.s8 %v755_v17  ;;  %v717_v29 = vpack.c.b8 %v716_v19, %v716_v19 }
  0x7b   : > { %vm2795_vm12 = vcmp.ne.s32.totalorder %v771_v23, 0  ;;  %vm743_vm13 = vnez %v717_v29 }
  0x7d   : > { %2169 = vmatpush3.bf16.xpose.msk.msra.mxu0 %vm2647_vm3, %v2164_v22  ;;  %1240 = vperm.xlu1 %2288, %v1194_v33   ;;  %v2789_v22 = vsel %vm410_vm7, 16843009, %v2460_v12  ;;  %v757_v33 = vsel %vm741_vm9, 16843009, %v2460_v12 }
  0x7e   : > { %2172 = vmatprep.subr.msk.bf16.mxu0 %vm2647_vm3, %v2170_v27 }
  0x81   : > { %1245 = vperm.xlu1 %2288, %v1195_v34  }
  0x85   : > { %2175 = vmatpush3.bf16.xpose.msk.msra.mxu0 %vm2647_vm3, %v2170_v27  ;;  %v407_v27 = vld [vmem:[%s2580_s21 + $0x18] sm:$0xff] }
  0x86   : > { %2178 = vmatprep.subr.msk.bf16.mxu0 %vm2647_vm3, %v2176_v32  ;;  %vm411_vm11 = vnez %v407_v27 }
  0x8d   : > { %2181 = vmatpush3.bf16.xpose.msk.msra.mxu0 %vm2647_vm3, %v2176_v32  ;;  %v699_v32 = vunpack.c.1.s8 %v2789_v22 }
  0x8e   : > { %2184 = vmatprep.subr.msk.bf16.mxu0 %vm2647_vm3, %v2182_v37 }
  0x95   : > { %2187 = vmatpush3.bf16.xpose.msk.msra.mxu0 %vm2647_vm3, %v2182_v37  ;;  %v770_v37 = vunpack.c.0.s8 %v754_v28 }
  0x96   : > { %2190 = vmatprep.subr.msk.bf16.mxu0 %vm2647_vm3, %v2188_v40 }
  0x97   : > { %vm2808_vm14 = vcmp.ne.s32.totalorder %v770_v37, 0 }
  0x9d   : > { %2193 = vmatpush3.bf16.xpose.msk.msra.mxu0 %vm2647_vm3, %v2188_v40  ;;  %v756_v40 = vsel %vm740_vm10, 16843009, %v2460_v12 }
  0xa4   : > { %2067 = vmatmul.mubr.msk.f32.vlgmr.msra.gmra.mrb[0].mxu0 %vm3341_vm2, %v413_v41  ;;  %v721_v41 = vpack.c.b8 %v720_v24, %v720_v24 }
  0xa5   : > { %2069 = vmatprep.mubr.msk.f32.mxu0 %vm3341_vm2, %v414_v42  ;;  %v773_v42 = vunpack.c.0.s8 %v757_v33 }
  0xa6   : > { %vm745_vm15 = vnez %v721_v41 }
  0xa7   : > { %vm2814_vm0 = vcmp.ne.s32.totalorder %v773_v42, 0  ;;  %v761_v59 = vsel %vm745_vm15, 16843009, %v2460_v12 }
  0xa8   : > { %2070 = vmatmul.mubr.msk.f32.gmra.mrb[2].mxu0 %vm3341_vm2, %v415_v43  ;;  %v724_v43 = vpack.c.b16 %v699_v32, %v699_v32  ;;  %v777_v9 = vunpack.c.0.s8 %v761_v59 }
  0xa9   : > { %2072 = vmatprep.mubr.msk.f32.mxu0 %vm3341_vm2, %v416_v44  ;;  %v701_v44 = vunpack.c.3.s8 %v2789_v22 }
  0xaa   : > { %vm2851_vm6 = vcmp.ne.s32.totalorder %v777_v9, 0  ;;  %v694_v9 = vunpack.c.0.s8 %v2782_v2 }
  0xac   : > { %2073 = vmatmul.mubr.msk.f32.gmra.mrb[4].mxu0 %vm3341_vm2, %v417_v45  ;;  %v2802_v45 = vsel %vm411_vm11, 16843009, %v2460_v12 }
  0xad   : > { %2075 = vmatprep.mubr.msk.f32.mxu0 %vm3341_vm2, %v418_v46  ;;  %v705_v1 = vunpack.c.3.s8 %v2802_v45 }
  0xaf   : > { %v736_v17 = vpack.c.b16 %v705_v1, %v705_v1 }
  0xb0   : > { %2076 = vmatmul.mubr.msk.f32.gmra.mrb[6].mxu0 %vm3341_vm2, %v419_v47  ;;  %v772_v47 = vunpack.c.0.s8 %v756_v40 }
  0xb1   : > { %2078 = vmatprep.mubr.msk.f32.mxu0 %vm3341_vm2, %v420_v48  ;;  %v737_v29 = vpack.c.b8 %v736_v17, %v736_v17 }
  0xb2   : > { %vm2819_vm1 = vcmp.ne.s32.totalorder %v772_v47, 0 }
  0xb3   : > { %vm753_vm9 = vnez %v737_v29 }
  0xb4   : > { %2079 = vmatmul.mubr.msk.f32.gmra.mrb[8].mxu0 %vm3341_vm2, %v421_v49 }
  0xb5   : > { %2081 = vmatprep.mubr.msk.f32.mxu0 %vm3341_vm2, %v422_v50 }
  0xb8   : > { %2082 = vmatmul.mubr.msk.f32.gmra.mrb[10].mxu0 %vm3341_vm2, %v423_v51  ;;  %v759_v51 = vsel %vm743_vm13, 16843009, %v2460_v12 }
  0xb9   : > { %2084 = vmatprep.mubr.msk.f32.mxu0 %vm3341_vm2, %v424_v52  ;;  %v775_v58 = vunpack.c.0.s8 %v759_v51  ;;  %v769_v51 = vsel %vm753_vm9, 16843009, %v2460_v12 }
  0xbb   : > { %vm2839_vm4 = vcmp.ne.s32.totalorder %v775_v58, 0  ;;  %v1187_v58 = vld [vmem:[%s2578_s20] sm:$0xff] }
  0xbc   : > { %2085 = vmatmul.mubr.msk.f32.gmra.mrb[12].mxu0 %vm3341_vm2, %v425_v53  ;;  %v725_v53 = vpack.c.b8 %v724_v43, %v724_v43 }
  0xbd   : > { %2087 = vmatprep.mubr.msk.f32.mxu0 %vm3341_vm2, %v426_v54  ;;  %v728_v54 = vpack.c.b16 %v701_v44, %v701_v44 }
  0xbe   : > { %vm747_vm3 = vnez %v725_v53 }
  0xbf   : > { %v729_v63 = vpack.c.b8 %v728_v54, %v728_v54  ;;  %v763_v13 = vsel %vm747_vm3, 16843009, %v2460_v12 }
  0xc0   : > { %2088 = vmatmul.mubr.msk.f32.gmra.mrb[14].mxu0 %vm3341_vm2, %v427_v55  ;;  %v703_v55 = vunpack.c.1.s8 %v2802_v45  ;;  %v779_v24 = vunpack.c.0.s8 %v763_v13  ;;  %v714_v13 = vpack.c.b16 %v694_v9, %v694_v9  ;;  %v1200_v9 = vld [vmem:[%s2578_s20 + $0x68] sm:$0xff] }
  0xc1   : > { %vm749_vm5 = vnez %v729_v63 }
  0xc2   : > { %v732_v0 = vpack.c.b16 %v703_v55, %v703_v55  ;;  %v765_v28 = vsel %vm749_vm5, 16843009, %v2460_v12  ;;  %vm2863_vm8 = vcmp.ne.s32.totalorder %v779_v24, 0  ;;  %v715_v17 = vpack.c.b8 %v714_v13, %v714_v13 }
  0xc3   : > { %v781_v40 = vunpack.c.0.s8 %v765_v28  ;;  %v698_v24 = vunpack.c.0.s8 %v2789_v22 }
  0xc4   : > { %v733_v14 = vpack.c.b8 %v732_v0, %v732_v0  ;;  %v3384_v0 = vmov 0  ;;  %vm742_vm15 = vnez %v715_v17 }
  0xc5   : > { %vm2875_vm10 = vcmp.ne.s32.totalorder %v781_v40, 0  ;;  %v722_v29 = vpack.c.b16 %v698_v24, %v698_v24  ;;  %v758_v40 = vsel %vm742_vm15, 16843009, %v2460_v12  ;;  %v1202_v24 = vld [vmem:[%s2578_s20 + $0x78] sm:$0xff] }
  0xc6   : > { %vm751_vm7 = vnez %v733_v14  ;;  %v696_v14 = vunpack.c.2.s8 %v2782_v2  ;;  %v774_v2 = vunpack.c.0.s8 %v758_v40 }
  0xc7   : > { %v767_v42 = vsel %vm751_vm7, 16843009, %v2460_v12 }
  0xc8   : > { %v783_v47 = vunpack.c.0.s8 %v767_v42  ;;  %v723_v42 = vpack.c.b8 %v722_v29, %v722_v29  ;;  %vm2919_vm7 = vcmp.ne.s32.totalorder %v774_v2, 0  ;;  %v3399_v2 = vmov 0 }
  0xca   : > { %vm2887_vm11 = vcmp.ne.s32.totalorder %v783_v47, 0  ;;  %v702_v47 = vunpack.c.0.s8 %v2802_v45  ;;  %vm746_vm5 = vnez %v723_v42 }
 0x177   : > { %v2068_v46 = vpop.f32.mrb[0].mxu0 }
 0x178   : > { %v607_v48 = vpop.f32.mrb[1].mxu0  ;;  %v2806_v49 = vsel %vm2795_vm12, %v2068_v46, -1e+30 }
 0x179   : > { %836 = vmax.xlane.f32.xlu0 %v2806_v49  ;;  %v2830_v61 = vsel %vm2808_vm14, %v607_v48, -1e+30 }
 0x17b   : > { %v2071_v56 = vpop.f32.mrb[2].mxu0 }
 0x17c   : > { %v2826_v60 = vsel %vm2814_vm0, %v2071_v56, -1e+30  ;;  %v617_v62 = vpop.f32.mrb[3].mxu0  ;;  %v785_v56 = vunpack.c.0.s8 %v769_v51  ;;  %v1198_v51 = vld [vmem:[%s2578_s20 + $0x58] sm:$0xff] }
 0x17d   : > { %840 = vmax.xlane.f32.xlu1 %v2826_v60  ;;  %834 = vmax.xlane.f32.xlu0 %v2830_v61  ;;  %v2837_v3 = vsel %vm2819_vm1, %v617_v62, -1e+30 }
 0x17e   : > { %vm2899_vm13 = vcmp.ne.s32.totalorder %v785_v56, 0 }
 0x17f   : > { %v2074_v4 = vpop.f32.mrb[4].mxu0  ;;  %v3385_v0 = vsel %vm2899_vm13, 4294967295, %v3384_v0 }
 0x180   : > { %v2843_v10 = vpop.f32.mrb[5].mxu0  ;;  %v2849_v18 = vsel %vm2839_vm4, %v2074_v4, -1e+30  ;;  %3386 = vst [vmem:[#allocation9_spill] sm:$0xff] %v3385_v0 }
 0x181   : > { %838 = vmax.xlane.f32.xlu1 %v2837_v3 }
 0x183   : > { %v2077_v19 = vpop.f32.mrb[6].mxu0 }
 0x184   : > { %v2855_v27 = vpop.f32.mrb[7].mxu0  ;;  %v2861_v32 = vsel %vm2851_vm6, %v2077_v19, -1e+30  ;;  %v718_v19 = vpack.c.b16 %v696_v14, %v696_v14  ;;  %v762_v14 = vsel %vm746_vm5, 16843009, %v2460_v12 }
 0x185   : > { %844 = vmax.xlane.f32.xlu1 %v2849_v18  ;;  %v778_v29 = vunpack.c.0.s8 %v762_v14  ;;  %v1197_v14 = vld [vmem:[%s2578_s20 + $0x50] sm:$0xff] }
 0x186   : > { %v719_v28 = vpack.c.b8 %v718_v19, %v718_v19 }
 0x187   : > { %v2080_v33 = vpop.f32.mrb[8].mxu0  ;;  %vm2941_vm5 = vcmp.ne.s32.totalorder %v778_v29, 0 }
 0x188   : > { %v2867_v41 = vpop.f32.mrb[9].mxu0  ;;  %v2873_v43 = vsel %vm2863_vm8, %v2080_v33, -1e+30  ;;  %v700_v33 = vunpack.c.2.s8 %v2789_v22  ;;  %vm744_vm3 = vnez %v719_v28  ;;  %v3387_v22 = vmov 0 }
 0x189   : > { %848 = vmax.xlane.f32.xlu1 %v2861_v32  ;;  %v3388_v22 = vsel %vm2919_vm7, 4294967295, %v3387_v22  ;;  %v2928_v28 = vsel %vm2919_vm7, %v2843_v10, -1e+30  ;;  %v3395_v10 = vmov 0 }
 0x18a   : > { %3389 = vst [vmem:[#allocation10_spill] sm:$0xff] %v3388_v22  ;;  %3390 = vst [vmem:[#allocation11_spill] sm:$0xff] %v2928_v28  ;;  %v3396_v10 = vsel %vm2941_vm5, 4294967295, %v3395_v10 }
 0x18b   : > { %v2083_v44 = vpop.f32.mrb[10].mxu0  ;;  %3397 = vst [vmem:[#allocation14_spill] sm:$0xff] %v3396_v10  ;;  %v823_v10 = vld [vmem:[#allocation2 + $0x28] sm:$0xff] }
 0x18c   : > { %v2879_v48 = vpop.f32.mrb[11].mxu0  ;;  %v2885_v53 = vsel %vm2875_vm10, %v2083_v44, -1e+30  ;;  %v726_v44 = vpack.c.b16 %v700_v33, %v700_v33 }
 0x18d   : > { %852 = vmax.xlane.f32.xlu1 %v2873_v43 }
 0x18e   : > { %v727_v56 = vpack.c.b8 %v726_v44, %v726_v44 }
 0x18f   : > { %v2086_v54 = vpop.f32.mrb[12].mxu0 }
 0x190   : > { %v2892_v59 = vpop.f32.mrb[13].mxu0  ;;  %v2897_v62 = vsel %vm2887_vm11, %v2086_v54, -1e+30  ;;  %v760_v54 = vsel %vm744_vm3, 16843009, %v2460_v12  ;;  %vm748_vm9 = vnez %v727_v56 }
 0x191   : > { %856 = vmax.xlane.f32.xlu1 %v2885_v53  ;;  %v776_v13 = vunpack.c.0.s8 %v760_v54  ;;  %v764_v33 = vsel %vm748_vm9, 16843009, %v2460_v12 }
 0x192   : > { %v780_v44 = vunpack.c.0.s8 %v764_v33 }
 0x193   : > { %1205 = vperm.xlu0 %2287, %v1187_v58   ;;  %v2089_v63 = vpop.f32.mrb[14].mxu0  ;;  %v730_v58 = vpack.c.b16 %v702_v47, %v702_v47  ;;  %vm2930_vm15 = vcmp.ne.s32.totalorder %v776_v13, 0  ;;  %v1211_v13 = vpop.permute.xlu1 %1210 }
 0x194   : > { %v677_v1 = vpop.f32.mrb[15].mxu0  ;;  %v2906_v4 = vsel %vm2899_vm13, %v2089_v63, -1e+30  ;;  %v704_v63 = vunpack.c.2.s8 %v2802_v45  ;;  %v3391_v45 = vmov 0  ;;  %v2939_v42 = vsel %vm2930_vm15, %v2855_v27, -1e+30 }
 0x195   : > { %860 = vmax.xlane.f32.xlu1 %v2897_v62  ;;  %v731_v17 = vpack.c.b8 %v730_v58, %v730_v58  ;;  %v3392_v45 = vsel %vm2930_vm15, 4294967295, %v3391_v45  ;;  %3394 = vst [vmem:[#allocation13_spill] sm:$0xff] %v2939_v42  ;;  %vm2952_vm2 = vcmp.ne.s32.totalorder %v780_v44, 0  ;;  %v3403_v58 = vmov 0 }
 0x196   : > { %v734_v19 = vpack.c.b16 %v704_v63, %v704_v63  ;;  %3393 = vst [vmem:[#allocation12_spill] sm:$0xff] %v3392_v45  ;;  %v3400_v2 = vsel %vm2952_vm2, 4294967295, %v3399_v2  ;;  %v2961_v56 = vsel %vm2952_vm2, %v2879_v48, -1e+30  ;;  %v3407_v63 = vmov 0 }
 0x197   : > { %vm750_vm3 = vnez %v731_v17  ;;  %3401 = vst [vmem:[#allocation16_spill] sm:$0xff] %v3400_v2  ;;  %3402 = vst [vmem:[#allocation17_spill] sm:$0xff] %v2961_v56  ;;  %v1199_v17 = vld [vmem:[%s2578_s20 + $0x60] sm:$0xff]  ;;  %v2999_v2 = vld [vmem:[#allocation2 + $0x10] sm:$0xff] }
 0x198   : > { %v735_v40 = vpack.c.b8 %v734_v19, %v734_v19  ;;  %v766_v47 = vsel %vm750_vm3, 16843009, %v2460_v12  ;;  %v1201_v19 = vld [vmem:[%s2578_s20 + $0x70] sm:$0xff] }
 0x199   : > { %864 = vmax.xlane.f32.xlu1 %v2906_v4  ;;  %v782_v27 = vunpack.c.0.s8 %v766_v47  ;;  %v2987_v47 = vld [vmem:[#allocation2 + $0x8] sm:$0xff] }
 0x19a   : > { %vm752_vm9 = vnez %v735_v40 }
 0x19b   : > { %v768_v54 = vsel %vm752_vm9, 16843009, %v2460_v12  ;;  %vm2963_vm3 = vcmp.ne.s32.totalorder %v782_v27, 0 }
 0x19c   : > { %v3404_v58 = vsel %vm2963_vm3, 4294967295, %v3403_v58  ;;  %v2971_v12 = vsel %vm2963_vm3, %v2892_v59, -1e+30  ;;  %v1216_v59 = vpop.permute.xlu1 %1215 }
 0x19d   : > { %3405 = vst [vmem:[#allocation18_spill] sm:$0xff] %v3404_v58  ;;  %3406 = vst [vmem:[#allocation19_spill] sm:$0xff] %v2971_v12  ;;  %v1285_v45 = vmul.f32 %v1216_v59, %v2641_v8  ;;  %v827_v8 = vld [vmem:[#allocation2 + $0x48] sm:$0xff] }
 0x1aa   : > { %1260 = vperm.xlu1 %2288, %v1198_v51   ;;  %v2950_v51 = vsel %vm2941_vm5, %v2867_v41, -1e+30  ;;  %v784_v41 = vunpack.c.0.s8 %v768_v54 }
 0x1ab   : > { %3398 = vst [vmem:[#allocation15_spill] sm:$0xff] %v2950_v51 }
 0x1ac   : > { %vm2973_vm9 = vcmp.ne.s32.totalorder %v784_v41, 0  ;;  %v821_v41 = vld [vmem:[#allocation2 + $0x18] sm:$0xff] }
 0x1ad   : > { %v3408_v63 = vsel %vm2973_vm9, 4294967295, %v3407_v63  ;;  %v2980_v48 = vsel %vm2973_vm9, %v677_v1, -1e+30  ;;  %vm1154_vm9 = vcmask 7168  }
 0x1ae   : > { %1270 = vperm.xlu1 %2288, %v1200_v9   ;;  %3409 = vst [vmem:[#allocation20_spill] sm:$0xff] %v3408_v63  ;;  %3410 = vst [vmem:[#allocation21_spill] sm:$0xff] %v2980_v48  ;;  %v1196_v9 = vld [vmem:[%s2578_s20 + $0x48] sm:$0xff] }
 0x1b2   : > { %1280 = vperm.xlu1 %2288, %v1202_v24   ;;  %842 = vmax.xlane.f32.xlu0 %v2928_v28  ;;  %v1221_v24 = vpop.permute.xlu1 %1220 }
 0x1b6   : > { %846 = vmax.xlane.f32.xlu0 %v2939_v42  ;;  %v1226_v29 = vpop.permute.xlu1 %1225 }
 0x1b7   : > { %v1287_v0 = vmul.f32 %v1226_v29, %v2666_v15  ;;  %v829_v15 = vld [vmem:[#allocation2 + $0x58] sm:$0xff] }
 0x1ba   : > { %850 = vmax.xlane.f32.xlu0 %v2950_v51  ;;  %v1231_v33 = vpop.permute.xlu1 %1230  ;;  %v825_v51 = vld [vmem:[#allocation2 + $0x38] sm:$0xff] }
 0x1be   : > { %854 = vmax.xlane.f32.xlu0 %v2961_v56  ;;  %v1236_v40 = vpop.permute.xlu1 %1235 }
 0x1bf   : > { %v1289_v59 = vmul.f32 %v1236_v40, %v2681_v20  ;;  %v3021_v40 = vld [vmem:[#allocation2 + $0x78] sm:$0xff] }
 0x1c2   : > { %858 = vmax.xlane.f32.xlu0 %v2971_v12  ;;  %v1241_v44 = vpop.permute.xlu1 %1240  ;;  %v1286_v12 = vmul.f32 %v1221_v24, %v2652_v11 }
 0x1c4   : > { %v2198_v28 = vpack.c.bf16 %v1286_v12, %v1285_v45 }
 0x1c6   : > { %862 = vmax.xlane.f32.xlu0 %v2980_v48  ;;  %v2989_v1 = vpop.permute.xlu1 %1245 }
 0x1dc   : > { %1250 = vperm.xlu0 %2287, %v1196_v9   ;;  %v818_v9 = vld [vmem:[#allocation2] sm:$0xff] }
 0x1e0   : > { %1255 = vperm.xlu0 %2287, %v1197_v14  }
 0x1e4   : > { %1265 = vperm.xlu0 %2287, %v1199_v17  }
 0x1e8   : > { %1275 = vperm.xlu0 %2287, %v1201_v19  }
 0x206   : > { %v837_v27 = vpop.xlane.xlu0 %836 }
 0x207   : > { %v2992_v54 = vmax.f32 %v2987_v47, %v837_v27 }
 0x209   : > { %1589 = vst.msk [vmem:[#allocation2 + $0x8] sm:$0xff] %vm1154_vm9, %v2992_v54  ;;  %937 = vperm.xlu0 %2287, %v2992_v54  }
 0x20a   : > { %v841_v17 = vpop.xlane.xlu1 %840  ;;  %v835_v19 = vpop.xlane.xlu0 %834 }
 0x20b   : > { %v869_v63 = vmax.f32 %v821_v41, %v841_v17  ;;  %v866_v58 = vmax.f32 %v818_v9, %v835_v19  ;;  %v1284_v17 = vmul.f32 %v1211_v13, %v2638_v7  ;;  %v1288_v7 = vmul.f32 %v1231_v33, %v2669_v16 }
 0x20d   : > { %1591 = vst.msk [vmem:[#allocation2 + $0x18] sm:$0xff] %vm1154_vm9, %v869_v63  ;;  %1588 = vst.msk [vmem:[#allocation2] sm:$0xff] %vm1154_vm9, %v866_v58  ;;  %947 = vperm.xlu0 %2287, %v869_v63   ;;  %932 = vperm.xlu1 %2288, %v866_v58   ;;  %v885_v12 = vsub.f32 %v821_v41, %v869_v63 }
 0x20e   : > { %v839_v27 = vpop.xlane.xlu1 %838 }
 0x20f   : > { %v3004_v14 = vmax.f32 %v2999_v2, %v839_v27  ;;  %v904_v33 = vmul.f32 1.442695, %v885_v12 }
 0x211   : > { %1590 = vst.msk [vmem:[#allocation2 + $0x10] sm:$0xff] %vm1154_vm9, %v3004_v14  ;;  %942 = vperm.xlu1 %2288, %v3004_v14  }
 0x212   : > { %v845_v19 = vpop.xlane.xlu1 %844  ;;  %v1206_v48 = vpop.permute.xlu0 %1205 }
 0x213   : > { %v871_v22 = vmax.f32 %v823_v10, %v845_v19  ;;  %v1283_v56 = vmul.f32 %v1206_v48, %v2635_v6  ;;  %v882_v6 = vsub.f32 %v818_v9, %v866_v58  ;;  %v2202_v48 = vpack.c.bf16 %v1288_v7, %v1287_v0  ;;  %v831_v0 = vld [vmem:[#allocation2 + $0x68] sm:$0xff] }
 0x215   : > { %1593 = vst.msk [vmem:[#allocation2 + $0x28] sm:$0xff] %vm1154_vm9, %v871_v22  ;;  %957 = vperm.xlu0 %2287, %v871_v22   ;;  %v2194_v27 = vpack.c.bf16 %v1284_v17, %v1283_v56  ;;  %v1290_v56 = vmul.f32 %v1241_v44, %v2684_v21  ;;  %v898_v16 = vmul.f32 1.442695, %v882_v6  ;;  %v887_v58 = vsub.f32 %v823_v10, %v871_v22 }
 0x216   : > { %v849_v42 = vpop.xlane.xlu1 %848 }
 0x217   : > { %v873_v13 = vmax.f32 %v825_v51, %v849_v42  ;;  %2195 = vmatprep.subr.bf16.mxu1 %v2194_v27  ;;  %v2206_v24 = vpack.c.bf16 %v1290_v56, %v1289_v59  ;;  %2289 = vpow2.f32 %v898_v16  ;;  %v822_v59 = vld [vmem:[#allocation2 + $0x20] sm:$0xff] }
 0x218   : > { %2197 = vmatpush3.bf16.msra.mxu1 %v2194_v27  ;;  %2291 = vpow2.f32 %v904_v33 }
 0x219   : > { %1595 = vst.msk [vmem:[#allocation2 + $0x38] sm:$0xff] %vm1154_vm9, %v873_v13  ;;  %967 = vperm.xlu0 %2287, %v873_v13   ;;  %2199 = vmatprep.subr.bf16.mxu1 %v2198_v28  ;;  %v889_v63 = vsub.f32 %v825_v51, %v873_v13 }
 0x21a   : > { %v853_v11 = vpop.xlane.xlu1 %852 }
 0x21b   : > { %v875_v45 = vmax.f32 %v827_v8, %v853_v11  ;;  %v912_v10 = vmul.f32 1.442695, %v889_v63 }
 0x21c   : > { %2201 = vmatpush3.bf16.msra.mxu1 %v2198_v28  ;;  %v908_v28 = vmul.f32 1.442695, %v887_v58 }
 0x21d   : > { %1597 = vst.msk [vmem:[#allocation2 + $0x48] sm:$0xff] %vm1154_vm9, %v875_v45  ;;  %977 = vperm.xlu0 %2287, %v875_v45   ;;  %2203 = vmatprep.subr.bf16.mxu1 %v2202_v48  ;;  %v891_v41 = vsub.f32 %v827_v8, %v875_v45 }
 0x21e   : > { %v857_v42 = vpop.xlane.xlu1 %856  ;;  %2293 = vpow2.f32 %v908_v28  ;;  %v884_v28 = vsub.f32 %v2999_v2, %v3004_v14 }
 0x21f   : > { %v877_v29 = vmax.f32 %v829_v15, %v857_v42  ;;  %2295 = vpow2.f32 %v912_v10  ;;  %v916_v17 = vmul.f32 1.442695, %v891_v41  ;;  %v830_v10 = vld [vmem:[#allocation2 + $0x60] sm:$0xff] }
 0x220   : > { %2205 = vmatpush3.bf16.msra.mxu1 %v2202_v48  ;;  %v902_v41 = vmul.f32 1.442695, %v884_v28 }
 0x221   : > { %1599 = vst.msk [vmem:[#allocation2 + $0x58] sm:$0xff] %vm1154_vm9, %v877_v29  ;;  %987 = vperm.xlu0 %2287, %v877_v29   ;;  %2207 = vmatprep.subr.bf16.mxu1 %v2206_v24  ;;  %v3032_v51 = vpop.eup %2289  ;;  %v893_v19 = vsub.f32 %v829_v15, %v877_v29  ;;  %2297 = vpow2.f32 %v916_v17  ;;  %v824_v15 = vld [vmem:[#allocation2 + $0x30] sm:$0xff]  ;;  %v826_v29 = vld [vmem:[#allocation2 + $0x40] sm:$0xff] }
 0x222   : > { %v861_v20 = vpop.xlane.xlu1 %860  ;;  %v3035_v27 = vpop.eup %2291 }
 0x223   : > { %v879_v21 = vmax.f32 %v831_v0, %v861_v20  ;;  %v920_v7 = vmul.f32 1.442695, %v893_v19  ;;  %v3411_v20 = vsub.f32 %v2987_v47, %v2992_v54 }
 0x224   : > { %2209 = vmatpush3.bf16.msra.mxu1 %v2206_v24 }
 0x225   : > { %1601 = vst.msk [vmem:[#allocation2 + $0x68] sm:$0xff] %vm1154_vm9, %v879_v21  ;;  %997 = vperm.xlu0 %2287, %v879_v21   ;;  %v895_v13 = vsub.f32 %v831_v0, %v879_v21  ;;  %2299 = vpow2.f32 %v920_v7  ;;  %v828_v0 = vld [vmem:[#allocation2 + $0x50] sm:$0xff]  ;;  %v900_v21 = vmul.f32 1.442695, %v3411_v20  ;;  %v1291_v20 = vmul.f32 %v2989_v1, %v2695_v25 }
 0x226   : > { %v865_v44 = vpop.xlane.xlu1 %864 }
 0x227   : > { %v3025_v22 = vmax.f32 %v3021_v40, %v865_v44  ;;  %v924_v6 = vmul.f32 1.442695, %v895_v13  ;;  %v3062_v13 = vld [vmem:[#allocation2 + $0x70] sm:$0xff] }
 0x228   : > { %v3038_v8 = vpop.eup %2293 }
 0x229   : > { %v897_v9 = vsub.f32 %v3021_v40, %v3025_v22  ;;  %1603 = vst.msk [vmem:[#allocation2 + $0x78] sm:$0xff] %vm1154_vm9, %v3025_v22  ;;  %1007 = vperm.xlu0 %2287, %v3025_v22   ;;  %v3041_v11 = vpop.eup %2295  ;;  %2301 = vpow2.f32 %v924_v6 }
 0x22a   : > { %2303 = vpow2.f32 %v900_v21 }
 0x22b   : > { %v3044_v48 = vpop.eup %2297  ;;  %2305 = vpow2.f32 %v902_v41  ;;  %v928_v46 = vmul.f32 1.442695, %v897_v9 }
 0x22d   : > { %1317 = vperm.xlu0 %2287, %v3032_v51  }
 0x22f   : > { %v3047_v56 = vpop.eup %2299 }
 0x231   : > { %1332 = vperm.xlu0 %2287, %v3035_v27  }
 0x233   : > { %v3050_v16 = vpop.eup %2301 }
 0x235   : > { %1342 = vperm.xlu0 %2287, %v3038_v8  }
 0x239   : > { %1352 = vperm.xlu0 %2287, %v3041_v11  }
 0x23d   : > { %1362 = vperm.xlu0 %2287, %v3044_v48  }
 0x23f   : > { %v843_v45 = vpop.xlane.xlu0 %842 }
 0x240   : > { %v870_v12 = vmax.f32 %v822_v59, %v843_v45 }
 0x241   : > { %1372 = vperm.xlu0 %2287, %v3047_v56  }
 0x242   : > { %1592 = vst.msk [vmem:[#allocation2 + $0x20] sm:$0xff] %vm1154_vm9, %v870_v12  ;;  %952 = vperm.xlu1 %2288, %v870_v12   ;;  %v886_v17 = vsub.f32 %v822_v59, %v870_v12  ;;  %v3073_v12 = vpop.eup %2303 }
 0x243   : > { %v847_v42 = vpop.xlane.xlu0 %846  ;;  %v3079_v28 = vpop.eup %2305 }
 0x244   : > { %v872_v24 = vmax.f32 %v824_v15, %v847_v42  ;;  %v906_v47 = vmul.f32 1.442695, %v886_v17  ;;  %v1261_v42 = vpop.permute.xlu1 %1260 }
 0x245   : > { %1382 = vperm.xlu0 %2287, %v3050_v16  }
 0x246   : > { %1594 = vst.msk [vmem:[#allocation2 + $0x30] sm:$0xff] %vm1154_vm9, %v872_v24  ;;  %962 = vperm.xlu1 %2288, %v872_v24   ;;  %v888_v54 = vsub.f32 %v824_v15, %v872_v24  ;;  %2307 = vpow2.f32 %v906_v47 }
 0x247   : > { %v851_v33 = vpop.xlane.xlu0 %850 }
 0x248   : > { %v874_v58 = vmax.f32 %v826_v29, %v851_v33  ;;  %v910_v59 = vmul.f32 1.442695, %v888_v54 }
 0x24a   : > { %1596 = vst.msk [vmem:[#allocation2 + $0x40] sm:$0xff] %vm1154_vm9, %v874_v58  ;;  %972 = vperm.xlu1 %2288, %v874_v58   ;;  %v890_v45 = vsub.f32 %v826_v29, %v874_v58  ;;  %2309 = vpow2.f32 %v910_v59  ;;  %v1271_v29 = vpop.permute.xlu1 %1270 }
 0x24b   : > { %v855_v63 = vpop.xlane.xlu0 %854  ;;  %v1296_v47 = vmul.f32 %v1271_v29, %v2726_v36 }
 0x24c   : > { %v876_v44 = vmax.f32 %v828_v0, %v855_v63  ;;  %v914_v15 = vmul.f32 1.442695, %v890_v45 }
 0x24e   : > { %1598 = vst.msk [vmem:[#allocation2 + $0x50] sm:$0xff] %vm1154_vm9, %v876_v44  ;;  %982 = vperm.xlu1 %2288, %v876_v44   ;;  %v892_v24 = vsub.f32 %v828_v0, %v876_v44  ;;  %2311 = vpow2.f32 %v914_v15 }
 0x24f   : > { %v859_v19 = vpop.xlane.xlu0 %858 }
 0x250   : > { %v878_v7 = vmax.f32 %v830_v10, %v859_v19  ;;  %v918_v58 = vmul.f32 1.442695, %v892_v24  ;;  %v1294_v19 = vmul.f32 %v1261_v42, %v2712_v31  ;;  %v3084_v44 = vpop.eup %2307  ;;  %v1281_v31 = vpop.permute.xlu1 %1280 }
 0x252   : > { %1600 = vst.msk [vmem:[#allocation2 + $0x60] sm:$0xff] %vm1154_vm9, %v878_v7  ;;  %992 = vperm.xlu1 %2288, %v878_v7   ;;  %v894_v41 = vsub.f32 %v830_v10, %v878_v7  ;;  %2313 = vpow2.f32 %v918_v58 }
 0x253   : > { %v863_v2 = vpop.xlane.xlu0 %862 }
 0x254   : > { %v3066_v14 = vmax.f32 %v3062_v13, %v863_v2  ;;  %v3089_v10 = vpop.eup %2309  ;;  %v1298_v2 = vmul.f32 %v1281_v31, %v2738_v39 }
 0x256   : > { %v896_v6 = vsub.f32 %v3062_v13, %v3066_v14  ;;  %1602 = vst.msk [vmem:[#allocation2 + $0x70] sm:$0xff] %vm1154_vm9, %v3066_v14  ;;  %1002 = vperm.xlu1 %2288, %v3066_v14  }
 0x258   : > { %v3094_v45 = vpop.eup %2311 }
 0x25a   : > { %1322 = vperm.xlu1 %2288, %v3073_v12  }
 0x25b   : > { %v1251_v33 = vpop.permute.xlu0 %1250 }
 0x25c   : > { %v1292_v21 = vmul.f32 %v1251_v33, %v2698_v26  ;;  %v922_v26 = vmul.f32 1.442695, %v894_v41 }
 0x25e   : > { %v2210_v63 = vpack.c.bf16 %v1292_v21, %v1291_v20  ;;  %1327 = vperm.xlu1 %2288, %v3079_v28   ;;  %2315 = vpow2.f32 %v922_v26 }
 0x25f   : > { %v1256_v17 = vpop.permute.xlu0 %1255 }
 0x260   : > { %v1293_v0 = vmul.f32 %v1256_v17, %v2709_v30  ;;  %2211 = vmatprep.subr.bf16.mxu1 %v2210_v63 }
 0x261   : > { %2213 = vmatpush3.bf16.msra.mxu1 %v2210_v63 }
 0x262   : > { %v2214_v25 = vpack.c.bf16 %v1294_v19, %v1293_v0  ;;  %1337 = vperm.xlu1 %2288, %v3084_v44  }
 0x263   : > { %v1266_v1 = vpop.permute.xlu0 %1265 }
 0x264   : > { %v1295_v54 = vmul.f32 %v1266_v1, %v2723_v35  ;;  %2215 = vmatprep.subr.bf16.mxu1 %v2214_v25  ;;  %v3097_v35 = vpop.eup %2313 }
 0x265   : > { %2217 = vmatpush3.bf16.msra.mxu1 %v2214_v25 }
 0x266   : > { %v2218_v30 = vpack.c.bf16 %v1296_v47, %v1295_v54  ;;  %1347 = vperm.xlu1 %2288, %v3089_v10  }
 0x267   : > { %v1276_v7 = vpop.permute.xlu0 %1275 }
 0x268   : > { %v1297_v59 = vmul.f32 %v1276_v7, %v2735_v38  ;;  %2219 = vmatprep.subr.bf16.mxu1 %v2218_v30  ;;  %v3100_v42 = vpop.eup %2315 }
 0x269   : > { %2221 = vmatpush3.bf16.msra.mxu1 %v2218_v30 }
 0x26a   : > { %v2222_v36 = vpack.c.bf16 %v1298_v2, %v1297_v59  ;;  %1357 = vperm.xlu1 %2288, %v3094_v45  }
 0x26c   : > { %2223 = vmatprep.subr.bf16.mxu1 %v2222_v36 }
 0x26d   : > { %2225 = vmatpush3.bf16.msra.mxu1 %v2222_v36 }
 0x26e   : > { %1367 = vperm.xlu1 %2288, %v3097_v35  }
 0x272   : > { %1377 = vperm.xlu1 %2288, %v3100_v42  }
 0x288   : > { %v938_v39 = vpop.permute.xlu0 %937 }
 0x289   : > { %v1011_v38 = vsub.f32 %v2806_v49, %v938_v39 }
 0x28b   : > { %v1028_v15 = vmul.f32 1.442695, %v1011_v38 }
 0x28c   : > { %v933_v24 = vpop.permute.xlu1 %932  ;;  %v948_v33 = vpop.permute.xlu0 %947 }
 0x28d   : > { %2317 = vpow2.f32 %v1028_v15  ;;  %v1010_v20 = vsub.f32 %v2830_v61, %v933_v24  ;;  %v1013_v21 = vsub.f32 %v2826_v60, %v948_v33 }
 0x28f   : > { %v1026_v63 = vmul.f32 1.442695, %v1010_v20  ;;  %v1032_v29 = vmul.f32 1.442695, %v1013_v21 }
 0x290   : > { %v943_v58 = vpop.permute.xlu1 %942 }
 0x291   : > { %2319 = vpow2.f32 %v1026_v63  ;;  %v1012_v41 = vsub.f32 %v2837_v3, %v943_v58 }
 0x292   : > { %2321 = vpow2.f32 %v1032_v29 }
 0x293   : > { %v1030_v17 = vmul.f32 1.442695, %v1012_v41 }
 0x294   : > { %v958_v19 = vpop.permute.xlu0 %957 }
 0x295   : > { %2323 = vpow2.f32 %v1030_v17  ;;  %v1015_v49 = vsub.f32 %v2849_v18, %v958_v19  ;;  %v926_v19 = vmul.f32 1.442695, %v896_v6  ;;  %v3416_v6 = vld [vmem:[#allocation17_spill] sm:$0xff] }
 0x297   : > { %v2318_v0 = vpop.eup %2317  ;;  %v1036_v25 = vmul.f32 1.442695, %v1015_v49 }
 0x298   : > { %v968_v26 = vpop.permute.xlu0 %967  ;;  %v1059_v61 = vsel %vm2795_vm12, %v2318_v0, 0.0 }
 0x299   : > { %2325 = vpow2.f32 %v1036_v25  ;;  %v1017_v60 = vsub.f32 %v2861_v32, %v968_v26  ;;  %1108 = vadd.xlane.f32.xlu0 %v1059_v61 }
 0x29b   : > { %v2320_v1 = vpop.eup %2319  ;;  %v1040_v47 = vmul.f32 1.442695, %v1017_v60  ;;  %v3414_v60 = vld [vmem:[#allocation13_spill] sm:$0xff] }
 0x29c   : > { %2122 = vmatprep.mubr.msk.f32.mxu1 %vm2808_vm14, %v2320_v1  ;;  %v978_v3 = vpop.permute.xlu0 %977  ;;  %v1058_v54 = vsel %vm2808_vm14, %v2320_v1, 0.0  ;;  %v2322_v31 = vpop.eup %2321 }
 0x29d   : > { %2327 = vpow2.f32 %v1040_v47  ;;  %v1019_v18 = vsub.f32 %v2873_v43, %v978_v3  ;;  %1106 = vadd.xlane.f32.xlu1 %v1058_v54  ;;  %2123 = vmatmul.mubr.msk.f32.vlgmr.msra.gmra.mrb[0].mxu1 %vm2795_vm12, %v2318_v0  ;;  %v1061_v34 = vsel %vm2814_vm0, %v2322_v31, 0.0  ;;  %v3413_v0 = vld [vmem:[#allocation11_spill] sm:$0xff] }
 0x29f   : > { %v2324_v30 = vpop.eup %2323  ;;  %v1044_v32 = vmul.f32 1.442695, %v1019_v18  ;;  %v3415_v18 = vld [vmem:[#allocation15_spill] sm:$0xff] }
 0x2a0   : > { %2125 = vmatprep.mubr.msk.f32.mxu1 %vm2819_vm1, %v2324_v30  ;;  %v988_v7 = vpop.permute.xlu0 %987  ;;  %v1060_v2 = vsel %vm2819_vm1, %v2324_v30, 0.0 }
 0x2a1   : > { %2329 = vpow2.f32 %v1044_v32  ;;  %v1021_v50 = vsub.f32 %v2885_v53, %v988_v7  ;;  %1110 = vadd.xlane.f32.xlu0 %v1060_v2  ;;  %2126 = vmatmul.mubr.msk.f32.gmra.mrb[2].mxu1 %vm2814_vm0, %v2322_v31 }
 0x2a2   : > { %1112 = vadd.xlane.f32.xlu1 %v1061_v34 }
 0x2a3   : > { %v2326_v43 = vpop.eup %2325  ;;  %v1048_v59 = vmul.f32 1.442695, %v1021_v50  ;;  %v1077_v50 = vld [vmem:[#allocation3 + $0x18] sm:$0xff] }
 0x2a4   : > { %v998_v36 = vpop.permute.xlu0 %997  ;;  %v1063_v39 = vsel %vm2839_vm4, %v2326_v43, 0.0 }
 0x2a5   : > { %2331 = vpow2.f32 %v1048_v59  ;;  %v1023_v57 = vsub.f32 %v2897_v62, %v998_v36  ;;  %v3418_v59 = vld [vmem:[#allocation19_spill] sm:$0xff] }
 0x2a6   : > { %1116 = vadd.xlane.f32.xlu1 %v1063_v39 }
 0x2a7   : > { %v2328_v38 = vpop.eup %2327  ;;  %v1052_v53 = vmul.f32 1.442695, %v1023_v57 }
 0x2a8   : > { %v1008_v15 = vpop.permute.xlu0 %1007  ;;  %v1065_v24 = vsel %vm2851_vm6, %v2328_v38, 0.0 }
 0x2a9   : > { %2333 = vpow2.f32 %v1052_v53  ;;  %v1025_v52 = vsub.f32 %v2906_v4, %v1008_v15 }
 0x2aa   : > { %1120 = vadd.xlane.f32.xlu1 %v1065_v24 }
 0x2ab   : > { %v2330_v33 = vpop.eup %2329  ;;  %v1056_v20 = vmul.f32 1.442695, %v1025_v52  ;;  %v3420_v52 = vld [vmem:[#allocation21_spill] sm:$0xff] }
 0x2ac   : > { %v1067_v21 = vsel %vm2863_vm8, %v2330_v33, 0.0  ;;  %v3192_v55 = vpop.permute.xlu0 %1317 }
 0x2ad   : > { %2335 = vpow2.f32 %v1056_v20 }
 0x2ae   : > { %1124 = vadd.xlane.f32.xlu1 %v1067_v21  ;;  %2337 = vpow2.f32 %v926_v19 }
 0x2af   : > { %v2332_v63 = vpop.eup %2331 }
 0x2b0   : > { %v1069_v62 = vsel %vm2875_vm10, %v2332_v63, 0.0 }
 0x2b2   : > { %1128 = vadd.xlane.f32.xlu1 %v1069_v62 }
 0x2b3   : > { %v2334_v29 = vpop.eup %2333 }
 0x2b4   : > { %v1071_v58 = vsel %vm2887_vm11, %v2334_v29, 0.0 }
 0x2b6   : > { %1132 = vadd.xlane.f32.xlu1 %v1071_v58 }
 0x2b7   : > { %v2336_v41 = vpop.eup %2335 }
 0x2b8   : > { %v1073_v17 = vsel %vm2899_vm13, %v2336_v41, 0.0  ;;  %v3146_v54 = vpop.eup %2337 }
 0x2ba   : > { %1136 = vadd.xlane.f32.xlu1 %v1073_v17 }
 0x2c1   : > { %v953_v49 = vpop.permute.xlu1 %952 }
 0x2c2   : > { %v1014_v25 = vsub.f32 %v3413_v0, %v953_v49 }
 0x2c4   : > { %v1034_v26 = vmul.f32 1.442695, %v1014_v25  ;;  %v3196_v25 = vpop.permute.xlu0 %1332 }
 0x2c5   : > { %v963_v61 = vpop.permute.xlu1 %962 }
 0x2c6   : > { %2339 = vpow2.f32 %v1034_v26  ;;  %v1016_v1 = vsub.f32 %v3414_v60, %v963_v61 }
 0x2c8   : > { %v1038_v47 = vmul.f32 1.442695, %v1016_v1  ;;  %v3200_v61 = vpop.permute.xlu0 %1342 }
 0x2c9   : > { %v973_v3 = vpop.permute.xlu1 %972 }
 0x2ca   : > { %2341 = vpow2.f32 %v1038_v47  ;;  %v1018_v31 = vsub.f32 %v3415_v18, %v973_v3  ;;  %v1075_v3 = vld [vmem:[#allocation3 + $0x8] sm:$0xff] }
 0x2cb   : > { %1387 = vperm.xlu1 %2288, %v3146_v54   ;;  %v1091_v18 = vmul.f32 %v3073_v12, %v1075_v3 }
 0x2cc   : > { %v1042_v13 = vmul.f32 1.442695, %v1018_v31 }
 0x2cd   : > { %v983_v14 = vpop.permute.xlu1 %982 }
 0x2ce   : > { %2343 = vpow2.f32 %v1042_v13  ;;  %v1020_v30 = vsub.f32 %v3416_v6, %v983_v14  ;;  %v1074_v14 = vld [vmem:[#allocation3] sm:$0xff] }
 0x2d0   : > { %v2340_v32 = vpop.eup %2339  ;;  %v1046_v7 = vmul.f32 1.442695, %v1020_v30  ;;  %v1090_v30 = vmul.f32 %v3032_v51, %v1074_v14 }
 0x2d1   : > { %v993_v2 = vpop.permute.xlu1 %992  ;;  %2128 = vmatprep.mubr.msk.f32.mxu1 %vm2919_vm7, %v2340_v32  ;;  %v1062_v34 = vsel %vm2919_vm7, %v2340_v32, 0.0 }
 0x2d2   : > { %2345 = vpow2.f32 %v1046_v7  ;;  %v1022_v36 = vsub.f32 %v3418_v59, %v993_v2  ;;  %1114 = vadd.xlane.f32.xlu0 %v1062_v34  ;;  %2129 = vmatmul.mubr.msk.f32.gmra.mrb[4].mxu1 %vm2839_vm4, %v2326_v43  ;;  %v1076_v7 = vld [vmem:[#allocation3 + $0x10] sm:$0xff]  ;;  %v1093_v59 = vmul.f32 %v3035_v27, %v1077_v50  ;;  %v1083_v27 = vld [vmem:[#allocation3 + $0x48] sm:$0xff] }
 0x2d3   : > { %v1092_v34 = vmul.f32 %v3079_v28, %v1076_v7  ;;  %v1084_v7 = vld [vmem:[#allocation3 + $0x50] sm:$0xff] }
 0x2d4   : > { %v2342_v39 = vpop.eup %2341  ;;  %v1050_v57 = vmul.f32 1.442695, %v1022_v36 }
 0x2d5   : > { %v1003_v53 = vpop.permute.xlu1 %1002  ;;  %2131 = vmatprep.mubr.msk.f32.mxu1 %vm2930_vm15, %v2342_v39  ;;  %v1064_v24 = vsel %vm2930_vm15, %v2342_v39, 0.0 }
 0x2d6   : > { %2347 = vpow2.f32 %v1050_v57  ;;  %v1024_v20 = vsub.f32 %v3420_v52, %v1003_v53  ;;  %1118 = vadd.xlane.f32.xlu0 %v1064_v24  ;;  %2132 = vmatmul.mubr.msk.f32.gmra.mrb[6].mxu1 %vm2851_vm6, %v2328_v38  ;;  %v1079_v57 = vld [vmem:[#allocation3 + $0x28] sm:$0xff]  ;;  %v1081_v24 = vld [vmem:[#allocation3 + $0x38] sm:$0xff] }
 0x2d7   : > { %v1095_v51 = vmul.f32 %v3038_v8, %v1079_v57  ;;  %v1097_v28 = vmul.f32 %v3041_v11, %v1081_v24 }
 0x2d8   : > { %v2344_v21 = vpop.eup %2343  ;;  %v1054_v62 = vmul.f32 1.442695, %v1024_v20 }
 0x2d9   : > { %2134 = vmatprep.mubr.msk.f32.mxu1 %vm2941_vm5, %v2344_v21  ;;  %v1066_v43 = vsel %vm2941_vm5, %v2344_v21, 0.0 }
 0x2da   : > { %2349 = vpow2.f32 %v1054_v62  ;;  %1122 = vadd.xlane.f32.xlu0 %v1066_v43  ;;  %2135 = vmatmul.mubr.msk.f32.gmra.mrb[8].mxu1 %vm2863_vm8, %v2330_v33  ;;  %v3424_v33 = vld [vmem:[#allocation20_spill] sm:$0xff]  ;;  %v1099_v62 = vmul.f32 %v3044_v48, %v1083_v27 }
 0x2db   : > { %vm3425_vm12 = vnez %v3424_v33  ;;  %2351 = vpow2.f32 %v928_v46  ;;  %v1085_v43 = vld [vmem:[#allocation3 + $0x58] sm:$0xff]  ;;  %v1078_v46 = vld [vmem:[#allocation3 + $0x20] sm:$0xff] }
 0x2dc   : > { %v2346_v58 = vpop.eup %2345  ;;  %v1101_v8 = vmul.f32 %v3047_v56, %v1085_v43  ;;  %v1094_v56 = vmul.f32 %v3084_v44, %v1078_v46  ;;  %v1100_v44 = vmul.f32 %v3097_v35, %v1084_v7  ;;  %v1307_v46 = vld [vmem:[#allocation4 + $0x40] sm:$0xff] }
 0x2dd   : > { %2137 = vmatprep.mubr.msk.f32.mxu1 %vm2952_vm2, %v2346_v58  ;;  %v1068_v23 = vsel %vm2952_vm2, %v2346_v58, 0.0  ;;  %vm3426_vm2 = vcmask 261120   ;;  %v1311_v7 = vld [vmem:[#allocation4 + $0x60] sm:$0xff] }
 0x2de   : > { %1126 = vadd.xlane.f32.xlu0 %v1068_v23  ;;  %2138 = vmatmul.mubr.msk.f32.gmra.mrb[10].mxu1 %vm2875_vm10, %v2332_v63  ;;  %v1087_v23 = vld [vmem:[#allocation3 + $0x68] sm:$0xff]  ;;  %vm3427_vm14 = vmmov %vm3426_vm2 }
 0x2df   : > { %v1103_v11 = vmul.f32 %v3050_v16, %v1087_v23  ;;  %vm3428_vm0 = vmmov %vm3426_vm2 }
 0x2e0   : > { %v2348_v38 = vpop.eup %2347  ;;  %vm3429_vm1 = vmmov %vm3428_vm0 }
 0x2e1   : > { %2140 = vmatprep.mubr.msk.f32.mxu1 %vm2963_vm3, %v2348_v38  ;;  %v1070_v49 = vsel %vm2963_vm3, %v2348_v38, 0.0  ;;  %vm3430_vm4 = vmmov %vm3428_vm0 }
 0x2e2   : > { %1130 = vadd.xlane.f32.xlu0 %v1070_v49  ;;  %2141 = vmatmul.mubr.msk.f32.gmra.mrb[12].mxu1 %vm2887_vm11, %v2334_v29  ;;  %v3194_v29 = vpop.permute.xlu1 %1322  ;;  %v1089_v49 = vld [vmem:[#allocation3 + $0x78] sm:$0xff]  ;;  %vm3431_vm6 = vmmov %vm3428_vm0 }
 0x2e3   : > { %vm3432_vm8 = vmmov %vm3428_vm0 }
 0x2e4   : > { %v2350_v37 = vpop.eup %2349  ;;  %vm3433_vm10 = vmmov %vm3428_vm0 }
 0x2e5   : > { %2143 = vmatprep.mubr.msk.f32.mxu1 %vm3425_vm12, %v2350_v37  ;;  %v1072_v0 = vsel %vm3425_vm12, %v2350_v37, 0.0  ;;  %v2352_v63 = vpop.eup %2351  ;;  %vm3434_vm11 = vmmov %vm3428_vm0 }
 0x2e6   : > { %1134 = vadd.xlane.f32.xlu0 %v1072_v0  ;;  %2144 = vmatmul.mubr.msk.f32.gmra.mrb[14].mxu1 %vm2899_vm13, %v2336_v41  ;;  %v3198_v26 = vpop.permute.xlu1 %1327  ;;  %v3204_v41 = vpop.permute.xlu0 %1352  ;;  %v1105_v48 = vmul.f32 %v2352_v63, %v1089_v49  ;;  %vm3435_vm13 = vmmov %vm3428_vm0 }
 0x2e7   : > { %vm3436_vm7 = vmmov %vm3428_vm0 }
 0x2e8   : > { %vm3437_vm15 = vmmov %vm3428_vm0 }
 0x2e9   : > { %vm3438_vm5 = vmmov %vm3428_vm0 }
 0x2ea   : > { %v3202_v60 = vpop.permute.xlu1 %1337  ;;  %v3208_v40 = vpop.permute.xlu0 %1362  ;;  %vm3439_vm3 = vmmov %vm3428_vm0 }
 0x2eb   : > { %vm3441_vm12 = vmmov %vm3428_vm0 }
 0x2ee   : > { %v3206_v4 = vpop.permute.xlu1 %1347  ;;  %v3212_v9 = vpop.permute.xlu0 %1372 }
 0x2f2   : > { %v3210_v22 = vpop.permute.xlu1 %1357  ;;  %v3216_v47 = vpop.permute.xlu0 %1382 }
 0x2f6   : > { %v3214_v1 = vpop.permute.xlu1 %1367 }
 0x2fa   : > { %v3219_v31 = vpop.permute.xlu1 %1377 }
 0x2fc   : > { %1392 = vperm.xlu0 %2287, %v2352_v63  }
 0x326   : > { %v1109_v13 = vpop.xlane.xlu0 %1108 }
 0x327   : > { %v1139_v6 = vadd.f32 %v1109_v13, %v1091_v18  ;;  %v1080_v18 = vld [vmem:[#allocation3 + $0x30] sm:$0xff] }
 0x328   : > { %v1096_v16 = vmul.f32 %v3089_v10, %v1080_v18  ;;  %v1310_v18 = vld [vmem:[#allocation4 + $0x58] sm:$0xff] }
 0x329   : > { %1156 = vst.msk [vmem:[#allocation3 + $0x8] sm:$0xff] %vm1154_vm9, %v1139_v6  ;;  %v1082_v6 = vld [vmem:[#allocation3 + $0x40] sm:$0xff] }
 0x32a   : > { %v1107_v32 = vpop.xlane.xlu1 %1106  ;;  %v1098_v63 = vmul.f32 %v3094_v45, %v1082_v6  ;;  %v1088_v45 = vld [vmem:[#allocation3 + $0x70] sm:$0xff] }
 0x32b   : > { %v1138_v2 = vadd.f32 %v1107_v32, %v1090_v30  ;;  %v1104_v27 = vmul.f32 %v3146_v54, %v1088_v45  ;;  %v1304_v54 = vld [vmem:[#allocation4 + $0x28] sm:$0xff] }
 0x32d   : > { %1155 = vst.msk [vmem:[#allocation3] sm:$0xff] %vm1154_vm9, %v1138_v2 }
 0x32e   : > { %v1111_v12 = vpop.xlane.xlu0 %1110 }
 0x32f   : > { %v1113_v36 = vpop.xlane.xlu1 %1112  ;;  %v1140_v39 = vadd.f32 %v1111_v12, %v1092_v34  ;;  %v1086_v34 = vld [vmem:[#allocation3 + $0x60] sm:$0xff] }
 0x330   : > { %v1141_v53 = vadd.f32 %v1113_v36, %v1093_v59  ;;  %v1300_v59 = vld [vmem:[#allocation4 + $0x8] sm:$0xff]  ;;  %v1299_v36 = vld [vmem:[#allocation4] sm:$0xff]  ;;  %v1102_v10 = vmul.f32 %v3100_v42, %v1086_v34  ;;  %v1407_v34 = vmul.f32 %v3219_v31, %v1311_v7 }
 0x331   : > { %1157 = vst.msk [vmem:[#allocation3 + $0x10] sm:$0xff] %vm1154_vm9, %v1140_v39  ;;  %v1396_v39 = vmul.f32 %v3194_v29, %v1300_v59  ;;  %v1314_v59 = vld [vmem:[#allocation4 + $0x78] sm:$0xff] }
 0x332   : > { %1158 = vst.msk [vmem:[#allocation3 + $0x18] sm:$0xff] %vm1154_vm9, %v1141_v53  ;;  %v1395_v53 = vmul.f32 %v3192_v55, %v1299_v36  ;;  %v1313_v36 = vld [vmem:[#allocation4 + $0x70] sm:$0xff] }
 0x333   : > { %v1117_v15 = vpop.xlane.xlu1 %1116 }
 0x334   : > { %v1143_v52 = vadd.f32 %v1117_v15, %v1095_v51  ;;  %v1302_v51 = vld [vmem:[#allocation4 + $0x18] sm:$0xff] }
 0x336   : > { %1160 = vst.msk [vmem:[#allocation3 + $0x28] sm:$0xff] %vm1154_vm9, %v1143_v52  ;;  %v1301_v52 = vld [vmem:[#allocation4 + $0x10] sm:$0xff] }
 0x337   : > { %v1121_v20 = vpop.xlane.xlu1 %1120  ;;  %v1397_v29 = vmul.f32 %v3198_v26, %v1301_v52 }
 0x338   : > { %v1145_v21 = vadd.f32 %v1121_v20, %v1097_v28 }
 0x33a   : > { %1162 = vst.msk [vmem:[#allocation3 + $0x38] sm:$0xff] %vm1154_vm9, %v1145_v21  ;;  %v1398_v21 = vmul.f32 %v3196_v25, %v1302_v51  ;;  %v1303_v25 = vld [vmem:[#allocation4 + $0x20] sm:$0xff] }
 0x33b   : > { %v1125_v5 = vpop.xlane.xlu1 %1124  ;;  %v1399_v26 = vmul.f32 %v3202_v60, %v1303_v25 }
 0x33c   : > { %v1147_v58 = vadd.f32 %v1125_v5, %v1099_v62 }
 0x33e   : > { %1164 = vst.msk [vmem:[#allocation3 + $0x48] sm:$0xff] %vm1154_vm9, %v1147_v58 }
 0x33f   : > { %v1129_v17 = vpop.xlane.xlu1 %1128 }
 0x340   : > { %v1149_v38 = vadd.f32 %v1129_v17, %v1101_v8  ;;  %v1400_v8 = vmul.f32 %v3200_v61, %v1304_v54  ;;  %v1306_v17 = vld [vmem:[#allocation4 + $0x38] sm:$0xff] }
 0x342   : > { %1166 = vst.msk [vmem:[#allocation3 + $0x58] sm:$0xff] %vm1154_vm9, %v1149_v38  ;;  %v1305_v38 = vld [vmem:[#allocation4 + $0x30] sm:$0xff] }
 0x343   : > { %v1133_v19 = vpop.xlane.xlu1 %1132 }
 0x344   : > { %v1151_v37 = vadd.f32 %v1133_v19, %v1103_v11 }
 0x346   : > { %1168 = vst.msk [vmem:[#allocation3 + $0x68] sm:$0xff] %vm1154_vm9, %v1151_v37  ;;  %v1402_v37 = vmul.f32 %v3204_v41, %v1306_v17 }
 0x347   : > { %v1137_v33 = vpop.xlane.xlu1 %1136 }
 0x348   : > { %v1153_v0 = vadd.f32 %v1137_v33, %v1105_v48  ;;  %v1308_v48 = vld [vmem:[#allocation4 + $0x48] sm:$0xff]  ;;  %v1401_v33 = vmul.f32 %v3206_v4, %v1305_v38 }
 0x349   : > { %v1404_v60 = vmul.f32 %v3208_v40, %v1308_v48 }
 0x34a   : > { %1170 = vst.msk [vmem:[#allocation3 + $0x78] sm:$0xff] %vm1154_vm9, %v1153_v0 }
 0x35f   : > { %v1115_v3 = vpop.xlane.xlu0 %1114 }
 0x360   : > { %v1142_v13 = vadd.f32 %v1115_v3, %v1094_v56 }
 0x362   : > { %1159 = vst.msk [vmem:[#allocation3 + $0x20] sm:$0xff] %vm1154_vm9, %v1142_v13  ;;  %v1403_v13 = vmul.f32 %v3210_v22, %v1307_v46 }
 0x363   : > { %v1119_v14 = vpop.xlane.xlu0 %1118 }
 0x364   : > { %v1144_v30 = vadd.f32 %v1119_v14, %v1096_v16  ;;  %v1309_v16 = vld [vmem:[#allocation4 + $0x50] sm:$0xff] }
 0x366   : > { %1161 = vst.msk [vmem:[#allocation3 + $0x30] sm:$0xff] %vm1154_vm9, %v1144_v30  ;;  %v1406_v30 = vmul.f32 %v3212_v9, %v1310_v18 }
 0x367   : > { %v1123_v32 = vpop.xlane.xlu0 %1122 }
 0x368   : > { %v1146_v2 = vadd.f32 %v1123_v32, %v1098_v63  ;;  %v1312_v63 = vld [vmem:[#allocation4 + $0x68] sm:$0xff]  ;;  %v1405_v32 = vmul.f32 %v3214_v1, %v1309_v16  ;;  %v1388_v1 = vpop.permute.xlu1 %1387 }
 0x36a   : > { %1163 = vst.msk [vmem:[#allocation3 + $0x40] sm:$0xff] %vm1154_vm9, %v1146_v2 }
 0x36b   : > { %v1127_v50 = vpop.xlane.xlu0 %1126 }
 0x36c   : > { %v1148_v12 = vadd.f32 %v1127_v50, %v1100_v44  ;;  %v1408_v50 = vmul.f32 %v3216_v47, %v1312_v63 }
 0x36e   : > { %1165 = vst.msk [vmem:[#allocation3 + $0x50] sm:$0xff] %vm1154_vm9, %v1148_v12 }
 0x36f   : > { %v1131_v57 = vpop.xlane.xlu0 %1130 }
 0x370   : > { %v1150_v15 = vadd.f32 %v1131_v57, %v1102_v10  ;;  %v2124_v24 = vpop.f32.mrb[0].mxu1 }
 0x371   : > { %v1557_v35 = vadd.f32 %v2124_v24, %v1396_v39  ;;  %v1477_v28 = vpop.f32.mrb[1].mxu1 }
 0x372   : > { %1167 = vst.msk [vmem:[#allocation3 + $0x60] sm:$0xff] %vm1154_vm9, %v1150_v15  ;;  %v1556_v20 = vadd.f32 %v1477_v28, %v1395_v53  ;;  %v1409_v53 = vmul.f32 %v1388_v1, %v1313_v36 }
 0x373   : > { %1573 = vst.msk [vmem:[#allocation4 + $0x8] sm:$0xff] %vm3426_vm2, %v1557_v35  ;;  %v1135_v42 = vpop.xlane.xlu0 %1134 }
 0x374   : > { %1572 = vst.msk [vmem:[#allocation4] sm:$0xff] %vm3427_vm14, %v1556_v20  ;;  %v1152_v55 = vadd.f32 %v1135_v42, %v1104_v27  ;;  %v2127_v62 = vpop.f32.mrb[2].mxu1 }
 0x375   : > { %v1559_v5 = vadd.f32 %v2127_v62, %v1398_v21  ;;  %v1487_v43 = vpop.f32.mrb[3].mxu1 }
 0x376   : > { %1169 = vst.msk [vmem:[#allocation3 + $0x70] sm:$0xff] %vm1154_vm9, %v1152_v55  ;;  %v1558_v58 = vadd.f32 %v1487_v43, %v1397_v29  ;;  %vm3440_vm9 = vmmov %vm3428_vm0 }
 0x377   : > { %1575 = vst.msk [vmem:[#allocation4 + $0x18] sm:$0xff] %vm3428_vm0, %v1559_v5 }
 0x378   : > { %1574 = vst.msk [vmem:[#allocation4 + $0x10] sm:$0xff] %vm3429_vm1, %v1558_v58 }
 0x37b   : > { %v1393_v9 = vpop.permute.xlu0 %1392 }
 0x37c   : > { %v1410_v45 = vmul.f32 %v1393_v9, %v1314_v59 }
 0x3a5   : > { %v2130_v23 = vpop.f32.mrb[4].mxu1 }
 0x3a6   : > { %v1561_v11 = vadd.f32 %v2130_v23, %v1400_v8  ;;  %v1497_v19 = vpop.f32.mrb[5].mxu1 }
 0x3a7   : > { %v1560_v49 = vadd.f32 %v1497_v19, %v1399_v26 }
 0x3a8   : > { %1577 = vst.msk [vmem:[#allocation4 + $0x28] sm:$0xff] %vm3430_vm4, %v1561_v11 }
 0x3a9   : > { %1576 = vst.msk [vmem:[#allocation4 + $0x20] sm:$0xff] %vm3431_vm6, %v1560_v49  ;;  %v2133_v0 = vpop.f32.mrb[6].mxu1 }
 0x3aa   : > { %v1563_v61 = vadd.f32 %v2133_v0, %v1402_v37  ;;  %v1507_v56 = vpop.f32.mrb[7].mxu1 }
 0x3ab   : > { %v1562_v3 = vadd.f32 %v1507_v56, %v1401_v33 }
 0x3ac   : > { %1579 = vst.msk [vmem:[#allocation4 + $0x38] sm:$0xff] %vm3432_vm8, %v1563_v61 }
 0x3ad   : > { %1578 = vst.msk [vmem:[#allocation4 + $0x30] sm:$0xff] %vm3433_vm10, %v1562_v3  ;;  %v2136_v41 = vpop.f32.mrb[8].mxu1 }
 0x3ae   : > { %v1565_v14 = vadd.f32 %v2136_v41, %v1404_v60  ;;  %v1517_v4 = vpop.f32.mrb[9].mxu1 }
 0x3af   : > { %v1564_v6 = vadd.f32 %v1517_v4, %v1403_v13 }
 0x3b0   : > { %1581 = vst.msk [vmem:[#allocation4 + $0x48] sm:$0xff] %vm3434_vm11, %v1565_v14 }
 0x3b1   : > { %1580 = vst.msk [vmem:[#allocation4 + $0x40] sm:$0xff] %vm3435_vm13, %v1564_v6  ;;  %v2139_v40 = vpop.f32.mrb[10].mxu1 }
 0x3b2   : > { %v1567_v2 = vadd.f32 %v2139_v40, %v1406_v30  ;;  %v1527_v22 = vpop.f32.mrb[11].mxu1 }
 0x3b3   : > { %v1566_v44 = vadd.f32 %v1527_v22, %v1405_v32 }
 0x3b4   : > { %1583 = vst.msk [vmem:[#allocation4 + $0x58] sm:$0xff] %vm3436_vm7, %v1567_v2 }
 0x3b5   : > { %1582 = vst.msk [vmem:[#allocation4 + $0x50] sm:$0xff] %vm3437_vm15, %v1566_v44  ;;  %v2142_v12 = vpop.f32.mrb[12].mxu1 }
 0x3b6   : > { %v1569_v10 = vadd.f32 %v2142_v12, %v1408_v50  ;;  %v1537_v39 = vpop.f32.mrb[13].mxu1 }
 0x3b7   : > { %v1568_v57 = vadd.f32 %v1537_v39, %v1407_v34 }
 0x3b8   : > { %1585 = vst.msk [vmem:[#allocation4 + $0x68] sm:$0xff] %vm3438_vm5, %v1569_v10 }
 0x3b9   : > { %1584 = vst.msk [vmem:[#allocation4 + $0x60] sm:$0xff] %vm3439_vm3, %v1568_v57  ;;  %v2145_v47 = vpop.f32.mrb[14].mxu1 }
 0x3ba   : > { %v1571_v51 = vadd.f32 %v2145_v47, %v1410_v45  ;;  %v1547_v15 = vpop.f32.mrb[15].mxu1 }
 0x3bb   : > { %v1570_v31 = vadd.f32 %v1547_v15, %v1409_v53 }
 0x3bc   : > { %1587 = vst.msk [vmem:[#allocation4 + $0x78] sm:$0xff] %vm3440_vm9, %v1571_v51 }
 0x3bd   : > { %1586 = vst.msk [vmem:[#allocation4 + $0x70] sm:$0xff] %vm3441_vm12, %v1570_v31 }
 0x3be PF: > { %p1966_p5 = scmp.ne.s32.totalorder %s2439_s25, 1 }
 0x3bf   : > { %v1610_v24 = vld [vmem:[#allocation3 + $0x10] sm:$0xff] (!%p1966_p5)  ;;  %v1608_v52 = vld [vmem:[#allocation3] sm:$0xff] (!%p1966_p5)  ;;  %v1611_v35 = vld [vmem:[#allocation3 + $0x18] sm:$0xff] (!%p1966_p5)  ;;  %v2461_v28 = vmov (!%p1966_p5), 0   ;;  %vm1768_vm2 = vcmask (!%p1966_p5), 261120  }
 0x3c0   : > { %1607 = sbr.rel (%p1966_p5) target bundleno = 1133 (0x46d), region = 86  ;;  %2354 = vset.pattern.permute.xlu1 (!%p1966_p5), %v2461_v28  ;;  %2353 = vset.pattern.permute.xlu0 (!%p1966_p5), %v2461_v28  ;;  %v1626_v20 = vmax.f32 (!%p1966_p5), %v1610_v24, 1e-20  ;;  %v1624_v27 = vmax.f32 (!%p1966_p5), %v1608_v52, 1e-20  ;;  %v1609_v42 = vld [vmem:[#allocation3 + $0x8] sm:$0xff] (!%p1966_p5) }
 0x3c1   : > { %v1627_v21 = vmax.f32 (!%p1966_p5), %v1611_v35, 1e-20  ;;  %v1613_v29 = vld [vmem:[#allocation3 + $0x28] sm:$0xff] (!%p1966_p5)  ;;  %v1625_v55 = vmax.f32 (!%p1966_p5), %v1609_v42, 1e-20  ;;  %v1612_v62 = vld [vmem:[#allocation3 + $0x20] sm:$0xff] (!%p1966_p5) }
 0x3c2   : > { %2355 = vrcp.f32 (!%p1966_p5), %v1626_v20  ;;  %v1629_v5 = vmax.f32 (!%p1966_p5), %v1613_v29, 1e-20  ;;  %v1628_v43 = vmax.f32 (!%p1966_p5), %v1612_v62, 1e-20  ;;  %v1615_v58 = vld [vmem:[#allocation3 + $0x38] sm:$0xff] (!%p1966_p5)  ;;  %v1614_v54 = vld [vmem:[#allocation3 + $0x30] sm:$0xff] (!%p1966_p5) }
 0x3c3   : > { %2357 = vrcp.f32 (!%p1966_p5), %v1624_v27  ;;  %v1631_v25 = vmax.f32 (!%p1966_p5), %v1615_v58, 1e-20  ;;  %v1630_v8 = vmax.f32 (!%p1966_p5), %v1614_v54, 1e-20  ;;  %v1617_v17 = vld [vmem:[#allocation3 + $0x48] sm:$0xff] (!%p1966_p5)  ;;  %v1616_v26 = vld [vmem:[#allocation3 + $0x40] sm:$0xff] (!%p1966_p5) }
 0x3c4   : > { %2359 = vrcp.f32 (!%p1966_p5), %v1627_v21  ;;  %v1633_v38 = vmax.f32 (!%p1966_p5), %v1617_v17, 1e-20  ;;  %v1632_v19 = vmax.f32 (!%p1966_p5), %v1616_v26, 1e-20  ;;  %v1619_v49 = vld [vmem:[#allocation3 + $0x58] sm:$0xff] (!%p1966_p5)  ;;  %v1618_v48 = vld [vmem:[#allocation3 + $0x50] sm:$0xff] (!%p1966_p5) }
 0x3c5   : > { %2361 = vrcp.f32 (!%p1966_p5), %v1625_v55  ;;  %v1635_v0 = vmax.f32 (!%p1966_p5), %v1619_v49, 1e-20  ;;  %v1634_v46 = vmax.f32 (!%p1966_p5), %v1618_v48, 1e-20  ;;  %v1621_v61 = vld [vmem:[#allocation3 + $0x68] sm:$0xff] (!%p1966_p5)  ;;  %v1620_v3 = vld [vmem:[#allocation3 + $0x60] sm:$0xff] (!%p1966_p5) }
 0x3c6   : > { %2363 = vrcp.f32 (!%p1966_p5), %v1629_v5  ;;  %v1637_v18 = vmax.f32 (!%p1966_p5), %v1621_v61, 1e-20  ;;  %v1636_v13 = vmax.f32 (!%p1966_p5), %v1620_v3, 1e-20  ;;  %v1623_v41 = vld [vmem:[#allocation3 + $0x78] sm:$0xff] (!%p1966_p5)  ;;  %v1622_v14 = vld [vmem:[#allocation3 + $0x70] sm:$0xff] (!%p1966_p5) }
 0x3c7   : > { %2365 = vrcp.f32 %v1628_v43  ;;  %v1639_v6 = vmax.f32 %v1623_v41, 1e-20  ;;  %v1638_v30 = vmax.f32 %v1622_v14, 1e-20  ;;  %v1642_v34 = vld [vmem:[#allocation4 + $0x10] sm:$0xff]  ;;  %v1640_v59 = vld [vmem:[#allocation4] sm:$0xff] }
 0x3c8   : > { %2367 = vrcp.f32 %v1631_v25  ;;  %v1643_v10 = vld [vmem:[#allocation4 + $0x18] sm:$0xff]  ;;  %v1641_v39 = vld [vmem:[#allocation4 + $0x8] sm:$0xff]  ;;  %v1644_v15 = vld [vmem:[#allocation4 + $0x20] sm:$0xff] }
 0x3c9   : > { %2369 = vrcp.f32 %v1630_v8  ;;  %v1645_v51 = vld [vmem:[#allocation4 + $0x28] sm:$0xff]  ;;  %v1647_v28 = vld [vmem:[#allocation4 + $0x38] sm:$0xff]  ;;  %v1646_v20 = vld [vmem:[#allocation4 + $0x30] sm:$0xff] }
 0x3ca   : > { %2371 = vrcp.f32 %v1633_v38  ;;  %v1649_v55 = vld [vmem:[#allocation4 + $0x48] sm:$0xff]  ;;  %v1648_v62 = vld [vmem:[#allocation4 + $0x40] sm:$0xff]  ;;  %v1651_v25 = vld [vmem:[#allocation4 + $0x58] sm:$0xff] }
 0x3cb   : > { %2373 = vrcp.f32 %v1632_v19  ;;  %v1650_v8 = vld [vmem:[#allocation4 + $0x50] sm:$0xff]  ;;  %v1652_v19 = vld [vmem:[#allocation4 + $0x60] sm:$0xff] }
 0x3cc   : > { %v2356_v23 = vpop.eup %2355  ;;  %2375 = vrcp.f32 %v1635_v0  ;;  %v1655_v0 = vld [vmem:[#allocation4 + $0x78] sm:$0xff] }
 0x3cd   : > { %v2358_v11 = vpop.eup %2357  ;;  %1684 = vperm.xlu1 %2354, %v2356_v23   ;;  %2377 = vrcp.f32 %v1634_v46  ;;  %v1654_v46 = vld [vmem:[#allocation4 + $0x70] sm:$0xff] }
 0x3ce   : > { %v2360_v37 = vpop.eup %2359  ;;  %1674 = vperm.xlu0 %2353, %v2358_v11   ;;  %2379 = vrcp.f32 %v1637_v18  ;;  %v1653_v11 = vld [vmem:[#allocation4 + $0x68] sm:$0xff] }
 0x3cf   : > { %v2362_v33 = vpop.eup %2361  ;;  %2381 = vrcp.f32 %v1636_v13 }
 0x3d0   : > { %v2364_v56 = vpop.eup %2363  ;;  %2383 = vrcp.f32 %v1639_v6 }
 0x3d1   : > { %1689 = vperm.xlu1 %2354, %v2360_v37   ;;  %v2366_v60 = vpop.eup %2365  ;;  %2385 = vrcp.f32 %v1638_v30 }
 0x3d2   : > { %1679 = vperm.xlu0 %2353, %v2362_v33   ;;  %v2368_v16 = vpop.eup %2367 }
 0x3d3   : > { %v2370_v4 = vpop.eup %2369 }
 0x3d4   : > { %v2372_v63 = vpop.eup %2371 }
 0x3d5   : > { %1699 = vperm.xlu1 %2354, %v2364_v56   ;;  %v2374_v32 = vpop.eup %2373 }
 0x3d6   : > { %1694 = vperm.xlu0 %2353, %v2366_v60   ;;  %v2376_v40 = vpop.eup %2375 }
 0x3d7   : > { %v2378_v7 = vpop.eup %2377 }
 0x3d8   : > { %v2380_v2 = vpop.eup %2379 }
 0x3d9   : > { %1709 = vperm.xlu1 %2354, %v2368_v16   ;;  %v2382_v22 = vpop.eup %2381 }
 0x3da   : > { %1704 = vperm.xlu0 %2353, %v2370_v4   ;;  %v2384_v44 = vpop.eup %2383 }
 0x3db   : > { %v2386_v50 = vpop.eup %2385 }
 0x3dd   : > { %1719 = vperm.xlu1 %2354, %v2372_v63  }
 0x3de   : > { %1714 = vperm.xlu0 %2353, %v2374_v32  }
 0x3e1   : > { %1729 = vperm.xlu1 %2354, %v2376_v40  }
 0x3e2   : > { %1724 = vperm.xlu0 %2353, %v2378_v7  }
 0x3e5   : > { %1739 = vperm.xlu1 %2354, %v2380_v2  }
 0x3e6   : > { %1734 = vperm.xlu0 %2353, %v2382_v22  }
 0x3e9   : > { %1749 = vperm.xlu1 %2354, %v2384_v44  }
 0x3ea   : > { %1744 = vperm.xlu0 %2353, %v2386_v50  }
 0x44c   : > { %v1685_v9 = vpop.permute.xlu1 %1684 }
 0x44d   : > { %v1754_v12 = vmul.f32 %v1685_v9, %v1642_v34  ;;  %v1675_v36 = vpop.permute.xlu0 %1674 }
 0x44e   : > { %v1752_v1 = vmul.f32 %v1675_v36, %v1640_v59 }
 0x44f   : > { %1771 = vst.msk [vmem:[%s2568_s14 + $0x10] sm:$0xff] %vm1768_vm2, %v1754_v12 }
 0x450   : > { %1769 = vst.msk [vmem:[%s2568_s14] sm:$0xff] %vm1768_vm2, %v1752_v1  ;;  %v1690_v57 = vpop.permute.xlu1 %1689 }
 0x451   : > { %v1755_v45 = vmul.f32 %v1690_v57, %v1643_v10  ;;  %v1680_v53 = vpop.permute.xlu0 %1679 }
 0x452   : > { %v1753_v47 = vmul.f32 %v1680_v53, %v1641_v39 }
 0x453   : > { %1772 = vst.msk [vmem:[%s2568_s14 + $0x18] sm:$0xff] %vm1768_vm2, %v1755_v45 }
 0x454   : > { %1770 = vst.msk [vmem:[%s2568_s14 + $0x8] sm:$0xff] %vm1768_vm2, %v1753_v47  ;;  %v1700_v31 = vpop.permute.xlu1 %1699 }
 0x455   : > { %v1757_v24 = vmul.f32 %v1700_v31, %v1645_v51  ;;  %v1695_v52 = vpop.permute.xlu0 %1694 }
 0x456   : > { %v1756_v35 = vmul.f32 %v1695_v52, %v1644_v15 }
 0x457   : > { %1774 = vst.msk [vmem:[%s2568_s14 + $0x28] sm:$0xff] %vm1768_vm2, %v1757_v24 }
 0x458   : > { %1773 = vst.msk [vmem:[%s2568_s14 + $0x20] sm:$0xff] %vm1768_vm2, %v1756_v35  ;;  %v1710_v27 = vpop.permute.xlu1 %1709 }
 0x459   : > { %v1759_v21 = vmul.f32 %v1710_v27, %v1647_v28  ;;  %v1705_v42 = vpop.permute.xlu0 %1704 }
 0x45a   : > { %v1758_v29 = vmul.f32 %v1705_v42, %v1646_v20 }
 0x45b   : > { %1776 = vst.msk [vmem:[%s2568_s14 + $0x38] sm:$0xff] %vm1768_vm2, %v1759_v21 }
 0x45c   : > { %1775 = vst.msk [vmem:[%s2568_s14 + $0x30] sm:$0xff] %vm1768_vm2, %v1758_v29  ;;  %v1720_v5 = vpop.permute.xlu1 %1719 }
 0x45d   : > { %v1761_v43 = vmul.f32 %v1720_v5, %v1649_v55  ;;  %v1715_v58 = vpop.permute.xlu0 %1714 }
 0x45e   : > { %v1760_v54 = vmul.f32 %v1715_v58, %v1648_v62 }
 0x45f   : > { %1778 = vst.msk [vmem:[%s2568_s14 + $0x48] sm:$0xff] %vm1768_vm2, %v1761_v43 }
 0x460   : > { %1777 = vst.msk [vmem:[%s2568_s14 + $0x40] sm:$0xff] %vm1768_vm2, %v1760_v54  ;;  %v1730_v17 = vpop.permute.xlu1 %1729 }
 0x461   : > { %v1763_v26 = vmul.f32 %v1730_v17, %v1651_v25  ;;  %v1725_v23 = vpop.permute.xlu0 %1724 }
 0x462   : > { %v1762_v38 = vmul.f32 %v1725_v23, %v1650_v8 }
 0x463   : > { %1780 = vst.msk [vmem:[%s2568_s14 + $0x58] sm:$0xff] %vm1768_vm2, %v1763_v26 }
 0x464   : > { %1779 = vst.msk [vmem:[%s2568_s14 + $0x50] sm:$0xff] %vm1768_vm2, %v1762_v38  ;;  %v1740_v49 = vpop.permute.xlu1 %1739 }
 0x465   : > { %v1765_v37 = vmul.f32 %v1740_v49, %v1653_v11  ;;  %v1735_v48 = vpop.permute.xlu0 %1734 }
 0x466   : > { %v1764_v33 = vmul.f32 %v1735_v48, %v1652_v19 }
 0x467   : > { %1782 = vst.msk [vmem:[%s2568_s14 + $0x68] sm:$0xff] %vm1768_vm2, %v1765_v37 }
 0x468   : > { %1781 = vst.msk [vmem:[%s2568_s14 + $0x60] sm:$0xff] %vm1768_vm2, %v1764_v33  ;;  %v1750_v61 = vpop.permute.xlu1 %1749 }
 0x469   : > { %v1767_v56 = vmul.f32 %v1750_v61, %v1655_v0  ;;  %v1745_v3 = vpop.permute.xlu0 %1744 }
 0x46a   : > { %v1766_v60 = vmul.f32 %v1745_v3, %v1654_v46 }
 0x46b   : > { %1784 = vst.msk [vmem:[%s2568_s14 + $0x78] sm:$0xff] %vm1768_vm2, %v1767_v56 }
 0x46c   : > { %1783 = vst.msk [vmem:[%s2568_s14 + $0x70] sm:$0xff] %vm1768_vm2, %v1766_v60 }
 0x46d PF: > { %s21_s28 = sadd.s32 1, %s2455_s28   ;;  %s3442_s23 = smov %s2435_s24 }
 0x46e   : > { %p18_p6 = scmp.ge.s32.totalorder %s21_s28, 6   ;;  %s3443_s24 = smov %s2546_s10 }
 0x46f   : > { %s3444_s25 = smov %s2447_s26  ;;  %s3445_s0 = smov %s2451_s27 }
 0x470   : > { %s3446_s26 = smov %s3449_s29  ;;  %s3447_s27 = smov %s3453_s30 }
 0x471   :  { %20 = sbr.rel (!%p18_p6) target bundleno = 19 (0x13), region = 130 }

</bundles_post_ra>
